<compile_context>
chip_gen: v7x
topology: tpu7x:2x2x1
jax: 0.10.0
libtpu: 0.0.40
codegen_flags: <defaults>
</compile_context>

<pallas_src>
import functools

import jax
import jax.numpy as jnp
from jax.experimental import pallas as pl
from jax.experimental.pallas import tpu as pltpu


# ---------------------------------------------------------------------------
# Kernels
# ---------------------------------------------------------------------------
def _conv3x3_stats_kernel(x_ref, w_ref, scale_ref, shift_ref,
                          out_ref, stats_ref, *, H, W, Cp, apply_relu):
    """One batch image: out = conv3x3(relu?(x*scale + shift)); emit sum/sumsq.

    x_ref     : (H, W, Cp)   f32 input image (lane-dense NHWC block)
    w_ref     : (9, Cp, Cp)  per-tap weight matrices (ci, co), compute dtype
    scale_ref : (1, Cp)      per-channel scale applied to the input (f32)
    shift_ref : (1, Cp)      per-channel shift applied to the input (f32)
    out_ref   : (H, W, Cp)   f32 pre-BN conv output (doubles as accumulator)
    stats_ref : (2, Cp)      per-image [sum ; sum of squares] of out (f32)
    """
    cdt = w_ref.dtype

    # Input transform: identity for conv1, fused bn1-normalize + ReLU for
    # conv2.  Done once in f32; MXU operands are cast per W-shift below.
    s = scale_ref[...].reshape(1, 1, Cp)
    b = shift_ref[...].reshape(1, 1, Cp)
    base = x_ref[...] * s + b
    if apply_relu:
        base = jnp.maximum(base, 0.0)

    # Column index used to zero the single wrapped column after a W-rotate.
    col = jax.lax.broadcasted_iota(jnp.int32, (1, W, 1), 1)

    first = True
    for dx in (0, -1, 1):                       # W-direction tap offset
        if dx == 0:
            xs = base
        elif dx == 1:                            # xs[:, x] = base[:, x + 1]
            xs = pltpu.roll(base, W - 1, axis=1) * (col < W - 1).astype(jnp.float32)
        else:                                    # xs[:, x] = base[:, x - 1]
            xs = pltpu.roll(base, 1, axis=1) * (col > 0).astype(jnp.float32)
        xs = xs.astype(cdt)                      # MXU operand dtype
        for dy in (0, -1, 1):                    # H-direction tap offset
            y0, y1 = max(0, -dy), H - max(0, dy)
            hs = y1 - y0
            t = (dy + 1) * 3 + (dx + 1)
            sv = xs[y0 + dy:y1 + dy, :, :].reshape(hs * W, Cp)
            contrib = jnp.dot(sv, w_ref[t],
                              preferred_element_type=jnp.float32
                              ).reshape(hs, W, Cp)
            if first:                            # center tap covers all rows
                out_ref[...] = contrib
                first = False
            else:
                out_ref[y0:y1, :, :] = out_ref[y0:y1, :, :] + contrib

    # Per-image BN partial statistics (reduced across the grid in the wrapper;
    # finalize uses var = E[x^2] - mean^2 in f32).
    y = out_ref[...].reshape(H * W, Cp)
    stats_ref[0:1, :] = jnp.sum(y, axis=0, keepdims=True)
    stats_ref[1:2, :] = jnp.sum(y * y, axis=0, keepdims=True)


def _bn_add_relu_kernel(h_ref, res_ref, scale_ref, shift_ref, o_ref, *, Cp):
    """Epilogue: out = relu(h * scale + shift + residual) for one image."""
    s = scale_ref[...].reshape(1, 1, Cp)
    b = shift_ref[...].reshape(1, 1, Cp)
    o_ref[...] = jnp.maximum(h_ref[...] * s + b + res_ref[...], 0.0)


# ---------------------------------------------------------------------------
# pallas_call wrappers
# ---------------------------------------------------------------------------
def _vmem_limit_bytes(need_bytes):
    """Derive a per-call VMEM limit from need + the chip's physical capacity."""
    try:
        cap = int(pltpu.get_tpu_info().vmem_capacity_bytes)
    except Exception:                     # pragma: no cover - conservative path
        cap = 64 * 1024 * 1024            # v7x-safe fallback
    budget = (cap * 3) // 4               # headroom (≈96 MiB v5e/v6e, ≈48 MiB v7x)
    return int(min(max(int(need_bytes), 16 * 1024 * 1024), budget))


def _conv3x3_with_stats(x, w, scale, shift, *, apply_relu):
    """Tiled conv3x3 (+ optional fused pre-normalize/ReLU) + BN partial stats."""
    N, H, W, Cp = x.shape
    img_bytes = H * W * Cp * 4
    wbytes = int(w.size) * w.dtype.itemsize
    need = 9 * img_bytes + 2 * wbytes + (4 << 20)
    flops = int(2 * N * H * W * 9 * Cp * Cp)
    bytes_io = int(2 * N * img_bytes + wbytes + N * 2 * Cp * 4)

    kern = functools.partial(_conv3x3_stats_kernel, H=H, W=W, Cp=Cp,
                             apply_relu=apply_relu)
    out, stats = pl.pallas_call(
        kern,
        grid=(N,),
        in_specs=[
            pl.BlockSpec((None, H, W, Cp), lambda i: (i, 0, 0, 0)),
            pl.BlockSpec((9, Cp, Cp), lambda i: (0, 0, 0)),
            pl.BlockSpec((1, Cp), lambda i: (0, 0)),
            pl.BlockSpec((1, Cp), lambda i: (0, 0)),
        ],
        out_specs=(
            pl.BlockSpec((None, H, W, Cp), lambda i: (i, 0, 0, 0)),
            pl.BlockSpec((None, 2, Cp), lambda i: (i, 0, 0)),
        ),
        out_shape=(
            jax.ShapeDtypeStruct((N, H, W, Cp), jnp.float32),
            jax.ShapeDtypeStruct((N, 2, Cp), jnp.float32),
        ),
        compiler_params=pltpu.CompilerParams(
            dimension_semantics=("parallel",),
            vmem_limit_bytes=_vmem_limit_bytes(need)),
        cost_estimate=pl.CostEstimate(flops=flops, transcendentals=0,
                                      bytes_accessed=bytes_io),
    )(x, w, scale, shift)
    return out, stats


def _bn_add_relu(h, res, scale, shift):
    """Tiled bn2-normalize + residual add + ReLU epilogue."""
    N, H, W, Cp = h.shape
    img_bytes = H * W * Cp * 4
    need = 7 * img_bytes + (2 << 20)
    kern = functools.partial(_bn_add_relu_kernel, Cp=Cp)
    return pl.pallas_call(
        kern,
        grid=(N,),
        in_specs=[
            pl.BlockSpec((None, H, W, Cp), lambda i: (i, 0, 0, 0)),
            pl.BlockSpec((None, H, W, Cp), lambda i: (i, 0, 0, 0)),
            pl.BlockSpec((1, Cp), lambda i: (0, 0)),
            pl.BlockSpec((1, Cp), lambda i: (0, 0)),
        ],
        out_specs=pl.BlockSpec((None, H, W, Cp), lambda i: (i, 0, 0, 0)),
        out_shape=jax.ShapeDtypeStruct((N, H, W, Cp), jnp.float32),
        compiler_params=pltpu.CompilerParams(
            dimension_semantics=("parallel",),
            vmem_limit_bytes=_vmem_limit_bytes(need)),
        cost_estimate=pl.CostEstimate(flops=int(4 * N * H * W * Cp),
                                      transcendentals=0,
                                      bytes_accessed=int(3 * N * img_bytes)),
    )(h, res, scale, shift)


# ---------------------------------------------------------------------------
# BasicBlock forward
# ---------------------------------------------------------------------------
def basic_block_pallas(x_nchw, w1_oihw, w2_oihw, eps=1e-5,
                       compute_dtype=jnp.float32):
    """BasicBlock forward.  compute_dtype = MXU operand dtype (weights + taps);
    accumulation, BN statistics and epilogues stay in f32.  Use
    compute_dtype=jnp.bfloat16 on v6e/v7x for ~2x MXU throughput."""
    N, Ci, H, W = x_nchw.shape
    Co = w1_oihw.shape[0]
    # TODO(synk): downsample / stride>1 not supported (module defaults used).
    assert Ci == Co and tuple(w2_oihw.shape[:2]) == (Co, Co)
    assert W % 8 == 0, "W must be a multiple of 8 (sublane tile)"
    C = Co
    Cp = max(128, ((C + 127) // 128) * 128)       # lane-dense channel padding
    count = float(N * H * W)

    # NCHW -> lane-dense padded NHWC once per block (keep this layout between
    # blocks when chaining; convert only at network boundaries).
    x = jnp.transpose(x_nchw, (0, 2, 3, 1)).astype(jnp.float32)
    x = jnp.pad(x, ((0, 0), (0, 0), (0, 0), (0, Cp - C)))

    def tap_weights(w_oihw):
        # (co, ci, kh, kw) -> (kh, kw, ci, co) -> (9, Cp_in, Cp_out)
        w = jnp.transpose(w_oihw, (2, 3, 1, 0)).astype(jnp.float32)
        w = jnp.pad(w, ((0, 0), (0, 0), (0, Cp - C), (0, Cp - C)))
        return w.reshape(9, Cp, Cp).astype(compute_dtype)

    w1m, w2m = tap_weights(w1_oihw), tap_weights(w2_oihw)

    def finalize(stats):
        # Two-phase BN: reduce per-image partials, fold into (scale, shift).
        s = jnp.sum(stats, axis=0)                         # (2, Cp)
        mean = s[0] / count
        var = jnp.maximum(s[1] / count - mean * mean, 0.0)
        rstd = jax.lax.rsqrt(var + eps)
        return rstd.reshape(1, Cp), (-mean * rstd).reshape(1, Cp)

    one = jnp.ones((1, Cp), jnp.float32)
    zero = jnp.zeros((1, Cp), jnp.float32)

    # conv1 (+ bn1 partial stats)
    h1, st1 = _conv3x3_with_stats(x, w1m, one, zero, apply_relu=False)
    sc1, sh1 = finalize(st1)
    # bn1-normalize + ReLU fused into conv2's input transform; conv2 (+ stats)
    h2, st2 = _conv3x3_with_stats(h1, w2m, sc1, sh1, apply_relu=True)
    sc2, sh2 = finalize(st2)
    # bn2-normalize + residual + ReLU epilogue
    out = _bn_add_relu(h2, x, sc2, sh2)

    return jnp.transpose(out[..., :C], (0, 3, 1, 2))       # back to NCHW


# ---------------------------------------------------------------------------
# Pure-JAX reference (same semantics)
# ---------------------------------------------------------------------------
def basic_block_ref(x_nchw, w1_oihw, w2_oihw, eps=1e-5):
    x = jnp.transpose(x_nchw, (0, 2, 3, 1)).astype(jnp.float32)
    w1 = jnp.transpose(w1_oihw, (2, 3, 1, 0)).astype(jnp.float32)
    w2 = jnp.transpose(w2_oihw, (2, 3, 1, 0)).astype(jnp.float32)
    dn = ('NHWC', 'HWIO', 'NHWC')

    def bn(z):
        m = jnp.mean(z, axis=(0, 1, 2), keepdims=True)
        v = jnp.mean((z - m) ** 2, axis=(0, 1, 2), keepdims=True)
        return (z - m) * jax.lax.rsqrt(v + eps)

    h = jax.lax.conv_general_dilated(x, w1, (1, 1), 'SAME', dimension_numbers=dn)
    h = jnp.maximum(bn(h), 0.0)
    h = jax.lax.conv_general_dilated(h, w2, (1, 1), 'SAME', dimension_numbers=dn)
    h = jnp.maximum(bn(h) + x, 0.0)
    return jnp.transpose(h, (0, 3, 1, 2))


if __name__ == "__main__":
    # Small deterministic configuration: batch=2, inplanes=planes=4, spatial=16.
    N, C, Hs, Ws = 2, 4, 16, 16

    key = jax.random.PRNGKey(0)
    kx_, k1, k2 = jax.random.split(key, 3)

    x = jax.random.normal(kx_, (N, C, Hs, Ws), dtype=jnp.float32)

    # Kaiming-normal init, mode='fan_out', relu: std = sqrt(2 / (out_ch*kH*kW))
    std = (2.0 / (C * 3 * 3)) ** 0.5
    w1 = jax.random.normal(k1, (C, C, 3, 3), dtype=jnp.float32) * std
    w2 = jax.random.normal(k2, (C, C, 3, 3), dtype=jnp.float32) * std

    ref = jax.block_until_ready(basic_block_ref(x, w1, w2))

    # f32 MXU path: strict check against the reference.
    out = jax.block_until_ready(basic_block_pallas(x, w1, w2))
    assert out.shape == (N, C, Hs, Ws), out.shape
    assert bool(jnp.allclose(out, ref, atol=1e-2, rtol=1e-2)), (
        "Pallas (f32) output mismatch vs JAX reference")

    # bf16 MXU-operand path (f32 accumulation + f32 BN/ReLU): loose check.
    out_bf16 = jax.block_until_ready(
        basic_block_pallas(x, w1, w2, compute_dtype=jnp.bfloat16))
    assert bool(jnp.allclose(out_bf16, ref, atol=1e-1, rtol=1e-1)), (
        "Pallas (bf16 MXU) output mismatch vs JAX reference")

    print("KERNEL_OK")
</pallas_src>

<mosaic_0001>
module attributes {stable_mosaic.version = 11 : i64} {
  func.func @_conv3x3_stats_kernel(%arg0: i32, %arg1: memref<1x16x16x128xf32, #tpu.memory_space<vmem>>, %arg2: memref<9x128x128xf32, #tpu.memory_space<vmem>>, %arg3: memref<1x128xf32, #tpu.memory_space<vmem>>, %arg4: memref<1x128xf32, #tpu.memory_space<vmem>>, %arg5: memref<1x16x16x128xf32, #tpu.memory_space<vmem>>, %arg6: memref<1x2x128xf32, #tpu.memory_space<vmem>>) attributes {dimension_semantics = [#tpu.dimension_semantics<parallel>], iteration_bounds = array<i64: 2>, scalar_prefetch = 0 : i64, scratch_operands = 0 : i64, tpu.core_type = #tpu.core_type<tc>, window_params = [{transform_indices = @transform_0, window_bounds = array<i64: 1, 16, 16, 128>}, {pipeline_mode = #tpu.pipeline_mode<synchronous>, transform_indices = @transform_1, window_bounds = array<i64: 9, 128, 128>}, {pipeline_mode = #tpu.pipeline_mode<synchronous>, transform_indices = @transform_2, window_bounds = array<i64: 1, 128>}, {pipeline_mode = #tpu.pipeline_mode<synchronous>, transform_indices = @transform_3, window_bounds = array<i64: 1, 128>}, {transform_indices = @transform_4, window_bounds = array<i64: 1, 16, 16, 128>}, {transform_indices = @transform_5, window_bounds = array<i64: 1, 2, 128>}]} {
    %c0 = arith.constant 0 : index
    %c0_0 = arith.constant 0 : index
    %0 = vector.load %arg3[%c0, %c0_0] : memref<1x128xf32, #tpu.memory_space<vmem>>, vector<1x128xf32>
    %1 = vector.shape_cast %0 : vector<1x128xf32> to vector<1x1x128xf32>
    %c0_1 = arith.constant 0 : index
    %c0_2 = arith.constant 0 : index
    %2 = vector.load %arg4[%c0_1, %c0_2] : memref<1x128xf32, #tpu.memory_space<vmem>>, vector<1x128xf32>
    %3 = vector.shape_cast %2 : vector<1x128xf32> to vector<1x1x128xf32>
    %c0_3 = arith.constant 0 : index
    %c0_4 = arith.constant 0 : index
    %c0_5 = arith.constant 0 : index
    %c0_6 = arith.constant 0 : index
    %4 = vector.load %arg1[%c0_3, %c0_4, %c0_5, %c0_6] : memref<1x16x16x128xf32, #tpu.memory_space<vmem>>, vector<1x16x16x128xf32>
    %5 = vector.shape_cast %4 : vector<1x16x16x128xf32> to vector<16x16x128xf32>
    %6 = vector.broadcast %1 : vector<1x1x128xf32> to vector<16x16x128xf32>
    %7 = arith.mulf %5, %6 : vector<16x16x128xf32>
    %8 = vector.broadcast %3 : vector<1x1x128xf32> to vector<16x16x128xf32>
    %9 = arith.addf %7, %8 : vector<16x16x128xf32>
    %10 = tpu.iota {dimensions = array<i32: 1>} : vector<1x16x1xi32>
    %11 = vector.shape_cast %9 : vector<16x16x128xf32> to vector<256x128xf32>
    %c4 = arith.constant 4 : index
    %c0_7 = arith.constant 0 : index
    %c0_8 = arith.constant 0 : index
    %12 = vector.load %arg2[%c4, %c0_7, %c0_8] : memref<9x128x128xf32, #tpu.memory_space<vmem>>, vector<1x128x128xf32>
    %13 = vector.shape_cast %12 : vector<1x128x128xf32> to vector<128x128xf32>
    %cst = arith.constant dense<0.000000e+00> : vector<256x128xf32>
    %14 = tpu.matmul %11, %13, %cst {dimension_numbers = #tpu.dot_dimension_numbers<[1], [0], [0], [1], [0, 0, 1, 1], [], []>} : vector<256x128xf32>, vector<128x128xf32>, vector<256x128xf32> -> vector<256x128xf32>
    %15 = vector.shape_cast %14 : vector<256x128xf32> to vector<16x16x128xf32>
    %c0_9 = arith.constant 0 : index
    %c0_10 = arith.constant 0 : index
    %c0_11 = arith.constant 0 : index
    %c0_12 = arith.constant 0 : index
    %16 = vector.load %arg5[%c0_9, %c0_10, %c0_11, %c0_12] : memref<1x16x16x128xf32, #tpu.memory_space<vmem>>, vector<1x16x16x128xf32>
    %17 = vector.shape_cast %16 : vector<1x16x16x128xf32> to vector<16x16x128xf32>
    %18 = vector.shape_cast %15 : vector<16x16x128xf32> to vector<1x16x16x128xf32>
    tpu.vector_store %arg5[%c0_9, %c0_10, %c0_11, %c0_12], %18 {strides = array<i32>} : memref<1x16x16x128xf32, #tpu.memory_space<vmem>>, vector<1x16x16x128xf32>,
    %19 = vector.extract_strided_slice %9 {offsets = [0, 0, 0], sizes = [15, 16, 128], strides = [1, 1, 1]} : vector<16x16x128xf32> to vector<15x16x128xf32>
    %20 = vector.shape_cast %19 : vector<15x16x128xf32> to vector<240x128xf32>
    %c1 = arith.constant 1 : index
    %c0_13 = arith.constant 0 : index
    %c0_14 = arith.constant 0 : index
    %21 = vector.load %arg2[%c1, %c0_13, %c0_14] : memref<9x128x128xf32, #tpu.memory_space<vmem>>, vector<1x128x128xf32>
    %22 = vector.shape_cast %21 : vector<1x128x128xf32> to vector<128x128xf32>
    %cst_15 = arith.constant dense<0.000000e+00> : vector<240x128xf32>
    %23 = tpu.matmul %20, %22, %cst_15 {dimension_numbers = #tpu.dot_dimension_numbers<[1], [0], [0], [1], [0, 0, 1, 1], [], []>} : vector<240x128xf32>, vector<128x128xf32>, vector<240x128xf32> -> vector<240x128xf32>
    %24 = vector.shape_cast %23 : vector<240x128xf32> to vector<15x16x128xf32>
    %c0_16 = arith.constant 0 : index
    %c1_17 = arith.constant 1 : index
    %c0_18 = arith.constant 0 : index
    %c0_19 = arith.constant 0 : index
    %25 = vector.load %arg5[%c0_16, %c1_17, %c0_18, %c0_19] : memref<1x16x16x128xf32, #tpu.memory_space<vmem>>, vector<1x15x16x128xf32>
    %26 = vector.shape_cast %25 : vector<1x15x16x128xf32> to vector<15x16x128xf32>
    %27 = arith.addf %26, %24 : vector<15x16x128xf32>
    %c0_20 = arith.constant 0 : index
    %c1_21 = arith.constant 1 : index
    %c0_22 = arith.constant 0 : index
    %c0_23 = arith.constant 0 : index
    %28 = vector.load %arg5[%c0_20, %c1_21, %c0_22, %c0_23] : memref<1x16x16x128xf32, #tpu.memory_space<vmem>>, vector<1x15x16x128xf32>
    %29 = vector.shape_cast %28 : vector<1x15x16x128xf32> to vector<15x16x128xf32>
    %30 = vector.shape_cast %27 : vector<15x16x128xf32> to vector<1x15x16x128xf32>
    tpu.vector_store %arg5[%c0_20, %c1_21, %c0_22, %c0_23], %30 {strides = array<i32>} : memref<1x16x16x128xf32, #tpu.memory_space<vmem>>, vector<1x15x16x128xf32>,
    %31 = vector.extract_strided_slice %9 {offsets = [1, 0, 0], sizes = [15, 16, 128], strides = [1, 1, 1]} : vector<16x16x128xf32> to vector<15x16x128xf32>
    %32 = vector.shape_cast %31 : vector<15x16x128xf32> to vector<240x128xf32>
    %c7 = arith.constant 7 : index
    %c0_24 = arith.constant 0 : index
    %c0_25 = arith.constant 0 : index
    %33 = vector.load %arg2[%c7, %c0_24, %c0_25] : memref<9x128x128xf32, #tpu.memory_space<vmem>>, vector<1x128x128xf32>
    %34 = vector.shape_cast %33 : vector<1x128x128xf32> to vector<128x128xf32>
    %cst_26 = arith.constant dense<0.000000e+00> : vector<240x128xf32>
    %35 = tpu.matmul %32, %34, %cst_26 {dimension_numbers = #tpu.dot_dimension_numbers<[1], [0], [0], [1], [0, 0, 1, 1], [], []>} : vector<240x128xf32>, vector<128x128xf32>, vector<240x128xf32> -> vector<240x128xf32>
    %36 = vector.shape_cast %35 : vector<240x128xf32> to vector<15x16x128xf32>
    %c0_27 = arith.constant 0 : index
    %c0_28 = arith.constant 0 : index
    %c0_29 = arith.constant 0 : index
    %c0_30 = arith.constant 0 : index
    %37 = vector.load %arg5[%c0_27, %c0_28, %c0_29, %c0_30] : memref<1x16x16x128xf32, #tpu.memory_space<vmem>>, vector<1x15x16x128xf32>
    %38 = vector.shape_cast %37 : vector<1x15x16x128xf32> to vector<15x16x128xf32>
    %39 = arith.addf %38, %36 : vector<15x16x128xf32>
    %c0_31 = arith.constant 0 : index
    %c0_32 = arith.constant 0 : index
    %c0_33 = arith.constant 0 : index
    %c0_34 = arith.constant 0 : index
    %40 = vector.load %arg5[%c0_31, %c0_32, %c0_33, %c0_34] : memref<1x16x16x128xf32, #tpu.memory_space<vmem>>, vector<1x15x16x128xf32>
    %41 = vector.shape_cast %40 : vector<1x15x16x128xf32> to vector<15x16x128xf32>
    %42 = vector.shape_cast %39 : vector<15x16x128xf32> to vector<1x15x16x128xf32>
    tpu.vector_store %arg5[%c0_31, %c0_32, %c0_33, %c0_34], %42 {strides = array<i32>} : memref<1x16x16x128xf32, #tpu.memory_space<vmem>>, vector<1x15x16x128xf32>,
    %c1_i32 = arith.constant 1 : i32
    %43 = tpu.dynamic_rotate %9 by %c1_i32 dim 1 : vector<16x16x128xf32>, i32 -> vector<16x16x128xf32>
    %c0_i32 = arith.constant 0 : i32
    %44 = vector.broadcast %c0_i32 : i32 to vector<1x16x1xi32>
    %45 = arith.cmpi sgt, %10, %44 : vector<1x16x1xi32>
    %46 = arith.extui %45 : vector<1x16x1xi1> to vector<1x16x1xi32>
    %47 = arith.sitofp %46 : vector<1x16x1xi32> to vector<1x16x1xf32>
    %48 = vector.broadcast %47 : vector<1x16x1xf32> to vector<16x16x128xf32>
    %49 = arith.mulf %43, %48 : vector<16x16x128xf32>
    %50 = vector.shape_cast %49 : vector<16x16x128xf32> to vector<256x128xf32>
    %c3 = arith.constant 3 : index
    %c0_35 = arith.constant 0 : index
    %c0_36 = arith.constant 0 : index
    %51 = vector.load %arg2[%c3, %c0_35, %c0_36] : memref<9x128x128xf32, #tpu.memory_space<vmem>>, vector<1x128x128xf32>
    %52 = vector.shape_cast %51 : vector<1x128x128xf32> to vector<128x128xf32>
    %cst_37 = arith.constant dense<0.000000e+00> : vector<256x128xf32>
    %53 = tpu.matmul %50, %52, %cst_37 {dimension_numbers = #tpu.dot_dimension_numbers<[1], [0], [0], [1], [0, 0, 1, 1], [], []>} : vector<256x128xf32>, vector<128x128xf32>, vector<256x128xf32> -> vector<256x128xf32>
    %54 = vector.shape_cast %53 : vector<256x128xf32> to vector<16x16x128xf32>
    %c0_38 = arith.constant 0 : index
    %c0_39 = arith.constant 0 : index
    %c0_40 = arith.constant 0 : index
    %c0_41 = arith.constant 0 : index
    %55 = vector.load %arg5[%c0_38, %c0_39, %c0_40, %c0_41] : memref<1x16x16x128xf32, #tpu.memory_space<vmem>>, vector<1x16x16x128xf32>
    %56 = vector.shape_cast %55 : vector<1x16x16x128xf32> to vector<16x16x128xf32>
    %57 = arith.addf %56, %54 : vector<16x16x128xf32>
    %c0_42 = arith.constant 0 : index
    %c0_43 = arith.constant 0 : index
    %c0_44 = arith.constant 0 : index
    %c0_45 = arith.constant 0 : index
    %58 = vector.load %arg5[%c0_42, %c0_43, %c0_44, %c0_45] : memref<1x16x16x128xf32, #tpu.memory_space<vmem>>, vector<1x16x16x128xf32>
    %59 = vector.shape_cast %58 : vector<1x16x16x128xf32> to vector<16x16x128xf32>
    %60 = vector.shape_cast %57 : vector<16x16x128xf32> to vector<1x16x16x128xf32>
    tpu.vector_store %arg5[%c0_42, %c0_43, %c0_44, %c0_45], %60 {strides = array<i32>} : memref<1x16x16x128xf32, #tpu.memory_space<vmem>>, vector<1x16x16x128xf32>,
    %61 = vector.extract_strided_slice %49 {offsets = [0, 0, 0], sizes = [15, 16, 128], strides = [1, 1, 1]} : vector<16x16x128xf32> to vector<15x16x128xf32>
    %62 = vector.shape_cast %61 : vector<15x16x128xf32> to vector<240x128xf32>
    %c0_46 = arith.constant 0 : index
    %c0_47 = arith.constant 0 : index
    %c0_48 = arith.constant 0 : index
    %63 = vector.load %arg2[%c0_46, %c0_47, %c0_48] : memref<9x128x128xf32, #tpu.memory_space<vmem>>, vector<1x128x128xf32>
    %64 = vector.shape_cast %63 : vector<1x128x128xf32> to vector<128x128xf32>
    %cst_49 = arith.constant dense<0.000000e+00> : vector<240x128xf32>
    %65 = tpu.matmul %62, %64, %cst_49 {dimension_numbers = #tpu.dot_dimension_numbers<[1], [0], [0], [1], [0, 0, 1, 1], [], []>} : vector<240x128xf32>, vector<128x128xf32>, vector<240x128xf32> -> vector<240x128xf32>
    %66 = vector.shape_cast %65 : vector<240x128xf32> to vector<15x16x128xf32>
    %c0_50 = arith.constant 0 : index
    %c1_51 = arith.constant 1 : index
    %c0_52 = arith.constant 0 : index
    %c0_53 = arith.constant 0 : index
    %67 = vector.load %arg5[%c0_50, %c1_51, %c0_52, %c0_53] : memref<1x16x16x128xf32, #tpu.memory_space<vmem>>, vector<1x15x16x128xf32>
    %68 = vector.shape_cast %67 : vector<1x15x16x128xf32> to vector<15x16x128xf32>
    %69 = arith.addf %68, %66 : vector<15x16x128xf32>
    %c0_54 = arith.constant 0 : index
    %c1_55 = arith.constant 1 : index
    %c0_56 = arith.constant 0 : index
    %c0_57 = arith.constant 0 : index
    %70 = vector.load %arg5[%c0_54, %c1_55, %c0_56, %c0_57] : memref<1x16x16x128xf32, #tpu.memory_space<vmem>>, vector<1x15x16x128xf32>
    %71 = vector.shape_cast %70 : vector<1x15x16x128xf32> to vector<15x16x128xf32>
    %72 = vector.shape_cast %69 : vector<15x16x128xf32> to vector<1x15x16x128xf32>
    tpu.vector_store %arg5[%c0_54, %c1_55, %c0_56, %c0_57], %72 {strides = array<i32>} : memref<1x16x16x128xf32, #tpu.memory_space<vmem>>, vector<1x15x16x128xf32>,
    %73 = vector.extract_strided_slice %49 {offsets = [1, 0, 0], sizes = [15, 16, 128], strides = [1, 1, 1]} : vector<16x16x128xf32> to vector<15x16x128xf32>
    %74 = vector.shape_cast %73 : vector<15x16x128xf32> to vector<240x128xf32>
    %c6 = arith.constant 6 : index
    %c0_58 = arith.constant 0 : index
    %c0_59 = arith.constant 0 : index
    %75 = vector.load %arg2[%c6, %c0_58, %c0_59] : memref<9x128x128xf32, #tpu.memory_space<vmem>>, vector<1x128x128xf32>
    %76 = vector.shape_cast %75 : vector<1x128x128xf32> to vector<128x128xf32>
    %cst_60 = arith.constant dense<0.000000e+00> : vector<240x128xf32>
    %77 = tpu.matmul %74, %76, %cst_60 {dimension_numbers = #tpu.dot_dimension_numbers<[1], [0], [0], [1], [0, 0, 1, 1], [], []>} : vector<240x128xf32>, vector<128x128xf32>, vector<240x128xf32> -> vector<240x128xf32>
    %78 = vector.shape_cast %77 : vector<240x128xf32> to vector<15x16x128xf32>
    %c0_61 = arith.constant 0 : index
    %c0_62 = arith.constant 0 : index
    %c0_63 = arith.constant 0 : index
    %c0_64 = arith.constant 0 : index
    %79 = vector.load %arg5[%c0_61, %c0_62, %c0_63, %c0_64] : memref<1x16x16x128xf32, #tpu.memory_space<vmem>>, vector<1x15x16x128xf32>
    %80 = vector.shape_cast %79 : vector<1x15x16x128xf32> to vector<15x16x128xf32>
    %81 = arith.addf %80, %78 : vector<15x16x128xf32>
    %c0_65 = arith.constant 0 : index
    %c0_66 = arith.constant 0 : index
    %c0_67 = arith.constant 0 : index
    %c0_68 = arith.constant 0 : index
    %82 = vector.load %arg5[%c0_65, %c0_66, %c0_67, %c0_68] : memref<1x16x16x128xf32, #tpu.memory_space<vmem>>, vector<1x15x16x128xf32>
    %83 = vector.shape_cast %82 : vector<1x15x16x128xf32> to vector<15x16x128xf32>
    %84 = vector.shape_cast %81 : vector<15x16x128xf32> to vector<1x15x16x128xf32>
    tpu.vector_store %arg5[%c0_65, %c0_66, %c0_67, %c0_68], %84 {strides = array<i32>} : memref<1x16x16x128xf32, #tpu.memory_space<vmem>>, vector<1x15x16x128xf32>,
    %c15_i32 = arith.constant 15 : i32
    %85 = tpu.dynamic_rotate %9 by %c15_i32 dim 1 : vector<16x16x128xf32>, i32 -> vector<16x16x128xf32>
    %c15_i32_69 = arith.constant 15 : i32
    %86 = vector.broadcast %c15_i32_69 : i32 to vector<1x16x1xi32>
    %87 = arith.cmpi slt, %10, %86 : vector<1x16x1xi32>
    %88 = arith.extui %87 : vector<1x16x1xi1> to vector<1x16x1xi32>
    %89 = arith.sitofp %88 : vector<1x16x1xi32> to vector<1x16x1xf32>
    %90 = vector.broadcast %89 : vector<1x16x1xf32> to vector<16x16x128xf32>
    %91 = arith.mulf %85, %90 : vector<16x16x128xf32>
    %92 = vector.shape_cast %91 : vector<16x16x128xf32> to vector<256x128xf32>
    %c5 = arith.constant 5 : index
    %c0_70 = arith.constant 0 : index
    %c0_71 = arith.constant 0 : index
    %93 = vector.load %arg2[%c5, %c0_70, %c0_71] : memref<9x128x128xf32, #tpu.memory_space<vmem>>, vector<1x128x128xf32>
    %94 = vector.shape_cast %93 : vector<1x128x128xf32> to vector<128x128xf32>
    %cst_72 = arith.constant dense<0.000000e+00> : vector<256x128xf32>
    %95 = tpu.matmul %92, %94, %cst_72 {dimension_numbers = #tpu.dot_dimension_numbers<[1], [0], [0], [1], [0, 0, 1, 1], [], []>} : vector<256x128xf32>, vector<128x128xf32>, vector<256x128xf32> -> vector<256x128xf32>
    %96 = vector.shape_cast %95 : vector<256x128xf32> to vector<16x16x128xf32>
    %c0_73 = arith.constant 0 : index
    %c0_74 = arith.constant 0 : index
    %c0_75 = arith.constant 0 : index
    %c0_76 = arith.constant 0 : index
    %97 = vector.load %arg5[%c0_73, %c0_74, %c0_75, %c0_76] : memref<1x16x16x128xf32, #tpu.memory_space<vmem>>, vector<1x16x16x128xf32>
    %98 = vector.shape_cast %97 : vector<1x16x16x128xf32> to vector<16x16x128xf32>
    %99 = arith.addf %98, %96 : vector<16x16x128xf32>
    %c0_77 = arith.constant 0 : index
    %c0_78 = arith.constant 0 : index
    %c0_79 = arith.constant 0 : index
    %c0_80 = arith.constant 0 : index
    %100 = vector.load %arg5[%c0_77, %c0_78, %c0_79, %c0_80] : memref<1x16x16x128xf32, #tpu.memory_space<vmem>>, vector<1x16x16x128xf32>
    %101 = vector.shape_cast %100 : vector<1x16x16x128xf32> to vector<16x16x128xf32>
    %102 = vector.shape_cast %99 : vector<16x16x128xf32> to vector<1x16x16x128xf32>
    tpu.vector_store %arg5[%c0_77, %c0_78, %c0_79, %c0_80], %102 {strides = array<i32>} : memref<1x16x16x128xf32, #tpu.memory_space<vmem>>, vector<1x16x16x128xf32>,
    %103 = vector.extract_strided_slice %91 {offsets = [0, 0, 0], sizes = [15, 16, 128], strides = [1, 1, 1]} : vector<16x16x128xf32> to vector<15x16x128xf32>
    %104 = vector.shape_cast %103 : vector<15x16x128xf32> to vector<240x128xf32>
    %c2 = arith.constant 2 : index
    %c0_81 = arith.constant 0 : index
    %c0_82 = arith.constant 0 : index
    %105 = vector.load %arg2[%c2, %c0_81, %c0_82] : memref<9x128x128xf32, #tpu.memory_space<vmem>>, vector<1x128x128xf32>
    %106 = vector.shape_cast %105 : vector<1x128x128xf32> to vector<128x128xf32>
    %cst_83 = arith.constant dense<0.000000e+00> : vector<240x128xf32>
    %107 = tpu.matmul %104, %106, %cst_83 {dimension_numbers = #tpu.dot_dimension_numbers<[1], [0], [0], [1], [0, 0, 1, 1], [], []>} : vector<240x128xf32>, vector<128x128xf32>, vector<240x128xf32> -> vector<240x128xf32>
    %108 = vector.shape_cast %107 : vector<240x128xf32> to vector<15x16x128xf32>
    %c0_84 = arith.constant 0 : index
    %c1_85 = arith.constant 1 : index
    %c0_86 = arith.constant 0 : index
    %c0_87 = arith.constant 0 : index
    %109 = vector.load %arg5[%c0_84, %c1_85, %c0_86, %c0_87] : memref<1x16x16x128xf32, #tpu.memory_space<vmem>>, vector<1x15x16x128xf32>
    %110 = vector.shape_cast %109 : vector<1x15x16x128xf32> to vector<15x16x128xf32>
    %111 = arith.addf %110, %108 : vector<15x16x128xf32>
    %c0_88 = arith.constant 0 : index
    %c1_89 = arith.constant 1 : index
    %c0_90 = arith.constant 0 : index
    %c0_91 = arith.constant 0 : index
    %112 = vector.load %arg5[%c0_88, %c1_89, %c0_90, %c0_91] : memref<1x16x16x128xf32, #tpu.memory_space<vmem>>, vector<1x15x16x128xf32>
    %113 = vector.shape_cast %112 : vector<1x15x16x128xf32> to vector<15x16x128xf32>
    %114 = vector.shape_cast %111 : vector<15x16x128xf32> to vector<1x15x16x128xf32>
    tpu.vector_store %arg5[%c0_88, %c1_89, %c0_90, %c0_91], %114 {strides = array<i32>} : memref<1x16x16x128xf32, #tpu.memory_space<vmem>>, vector<1x15x16x128xf32>,
    %115 = vector.extract_strided_slice %91 {offsets = [1, 0, 0], sizes = [15, 16, 128], strides = [1, 1, 1]} : vector<16x16x128xf32> to vector<15x16x128xf32>
    %116 = vector.shape_cast %115 : vector<15x16x128xf32> to vector<240x128xf32>
    %c8 = arith.constant 8 : index
    %c0_92 = arith.constant 0 : index
    %c0_93 = arith.constant 0 : index
    %117 = vector.load %arg2[%c8, %c0_92, %c0_93] : memref<9x128x128xf32, #tpu.memory_space<vmem>>, vector<1x128x128xf32>
    %118 = vector.shape_cast %117 : vector<1x128x128xf32> to vector<128x128xf32>
    %cst_94 = arith.constant dense<0.000000e+00> : vector<240x128xf32>
    %119 = tpu.matmul %116, %118, %cst_94 {dimension_numbers = #tpu.dot_dimension_numbers<[1], [0], [0], [1], [0, 0, 1, 1], [], []>} : vector<240x128xf32>, vector<128x128xf32>, vector<240x128xf32> -> vector<240x128xf32>
    %120 = vector.shape_cast %119 : vector<240x128xf32> to vector<15x16x128xf32>
    %c0_95 = arith.constant 0 : index
    %c0_96 = arith.constant 0 : index
    %c0_97 = arith.constant 0 : index
    %c0_98 = arith.constant 0 : index
    %121 = vector.load %arg5[%c0_95, %c0_96, %c0_97, %c0_98] : memref<1x16x16x128xf32, #tpu.memory_space<vmem>>, vector<1x15x16x128xf32>
    %122 = vector.shape_cast %121 : vector<1x15x16x128xf32> to vector<15x16x128xf32>
    %123 = arith.addf %122, %120 : vector<15x16x128xf32>
    %c0_99 = arith.constant 0 : index
    %c0_100 = arith.constant 0 : index
    %c0_101 = arith.constant 0 : index
    %c0_102 = arith.constant 0 : index
    %124 = vector.load %arg5[%c0_99, %c0_100, %c0_101, %c0_102] : memref<1x16x16x128xf32, #tpu.memory_space<vmem>>, vector<1x15x16x128xf32>
    %125 = vector.shape_cast %124 : vector<1x15x16x128xf32> to vector<15x16x128xf32>
    %126 = vector.shape_cast %123 : vector<15x16x128xf32> to vector<1x15x16x128xf32>
    tpu.vector_store %arg5[%c0_99, %c0_100, %c0_101, %c0_102], %126 {strides = array<i32>} : memref<1x16x16x128xf32, #tpu.memory_space<vmem>>, vector<1x15x16x128xf32>,
    %c0_103 = arith.constant 0 : index
    %c0_104 = arith.constant 0 : index
    %c0_105 = arith.constant 0 : index
    %c0_106 = arith.constant 0 : index
    %127 = vector.load %arg5[%c0_103, %c0_104, %c0_105, %c0_106] : memref<1x16x16x128xf32, #tpu.memory_space<vmem>>, vector<1x16x16x128xf32>
    %128 = vector.shape_cast %127 : vector<1x16x16x128xf32> to vector<16x16x128xf32>
    %129 = vector.shape_cast %128 : vector<16x16x128xf32> to vector<256x128xf32>
    %cst_107 = arith.constant dense<0.000000e+00> : vector<128xf32>
    %130 = vector.multi_reduction <add>, %129, %cst_107 [0] : vector<256x128xf32> to vector<128xf32>
    %131 = vector.shape_cast %130 : vector<128xf32> to vector<1x128xf32>
    %c0_108 = arith.constant 0 : index
    %c0_109 = arith.constant 0 : index
    %c0_110 = arith.constant 0 : index
    %132 = vector.load %arg6[%c0_108, %c0_109, %c0_110] : memref<1x2x128xf32, #tpu.memory_space<vmem>>, vector<1x1x128xf32>
    %133 = vector.shape_cast %132 : vector<1x1x128xf32> to vector<1x128xf32>
    %134 = vector.shape_cast %131 : vector<1x128xf32> to vector<1x1x128xf32>
    tpu.vector_store %arg6[%c0_108, %c0_109, %c0_110], %134 {strides = array<i32>} : memref<1x2x128xf32, #tpu.memory_space<vmem>>, vector<1x1x128xf32>,
    %135 = arith.mulf %129, %129 : vector<256x128xf32>
    %cst_111 = arith.constant dense<0.000000e+00> : vector<128xf32>
    %136 = vector.multi_reduction <add>, %135, %cst_111 [0] : vector<256x128xf32> to vector<128xf32>
    %137 = vector.shape_cast %136 : vector<128xf32> to vector<1x128xf32>
    %c0_112 = arith.constant 0 : index
    %c1_113 = arith.constant 1 : index
    %c0_114 = arith.constant 0 : index
    %138 = vector.load %arg6[%c0_112, %c1_113, %c0_114] : memref<1x2x128xf32, #tpu.memory_space<vmem>>, vector<1x1x128xf32>
    %139 = vector.shape_cast %138 : vector<1x1x128xf32> to vector<1x128xf32>
    %140 = vector.shape_cast %137 : vector<1x128xf32> to vector<1x1x128xf32>
    tpu.vector_store %arg6[%c0_112, %c1_113, %c0_114], %140 {strides = array<i32>} : memref<1x2x128xf32, #tpu.memory_space<vmem>>, vector<1x1x128xf32>,
    return
  }
  func.func @transform_0(%arg0: i32) -> (i32, i32, i32, i32) {
    %c0_i32 = arith.constant 0 : i32
    %c0_i32_0 = arith.constant 0 : i32
    %c0_i32_1 = arith.constant 0 : i32
    %c0_i32_2 = arith.constant 0 : i32
    return %arg0, %c0_i32, %c0_i32_0, %c0_i32_1 : i32, i32, i32, i32
  }
  func.func @transform_1(%arg0: i32) -> (i32, i32, i32) {
    %c0_i32 = arith.constant 0 : i32
    %c0_i32_0 = arith.constant 0 : i32
    %c0_i32_1 = arith.constant 0 : i32
    %c0_i32_2 = arith.constant 0 : i32
    return %c0_i32, %c0_i32_0, %c0_i32_1 : i32, i32, i32
  }
  func.func @transform_2(%arg0: i32) -> (i32, i32) {
    %c0_i32 = arith.constant 0 : i32
    %c0_i32_0 = arith.constant 0 : i32
    %c0_i32_1 = arith.constant 0 : i32
    return %c0_i32, %c0_i32_0 : i32, i32
  }
  func.func @transform_3(%arg0: i32) -> (i32, i32) {
    %c0_i32 = arith.constant 0 : i32
    %c0_i32_0 = arith.constant 0 : i32
    %c0_i32_1 = arith.constant 0 : i32
    return %c0_i32, %c0_i32_0 : i32, i32
  }
  func.func @transform_4(%arg0: i32) -> (i32, i32, i32, i32) {
    %c0_i32 = arith.constant 0 : i32
    %c0_i32_0 = arith.constant 0 : i32
    %c0_i32_1 = arith.constant 0 : i32
    %c0_i32_2 = arith.constant 0 : i32
    return %arg0, %c0_i32, %c0_i32_0, %c0_i32_1 : i32, i32, i32, i32
  }
  func.func @transform_5(%arg0: i32) -> (i32, i32, i32) {
    %c0_i32 = arith.constant 0 : i32
    %c0_i32_0 = arith.constant 0 : i32
    %c0_i32_1 = arith.constant 0 : i32
    return %arg0, %c0_i32, %c0_i32_0 : i32, i32, i32
  }
}

</mosaic_0001>

<bundles_post_ra>
// kernel: tpu_custom_call.1
= control target key start
LH: loop header
LB: loop body
LE: loop exit
PB: predicated region body
PF: predicated region fallthrough
CT: control target
= control target key end

     0   :  { %11 = vsyncpa [#allocation3], 0  ;;  %s7625_s0 = inlined_call_operand.hbm [shape: f32[2,16,16,128], index: 0, kind: input, shape index: {}]   ;;  %s7626_s1 = inlined_call_operand.hbm [shape: f32[9,128,128], index: 1, kind: input, shape index: {}]   ;;  %s7627_s2 = inlined_call_operand.vmem [shape: f32[1,128], index: 2, kind: input, shape index: {}]   ;;  %s7628_s3 = inlined_call_operand.vmem [shape: f32[1,128], index: 3, kind: input, shape index: {}]   ;;  %s7629_s4 = inlined_call_operand.hbm [shape: f32[2,16,16,128], index: 4, kind: output, shape index: {0}]   ;;  %s7630_s5 = inlined_call_operand.hbm [shape: f32[2,2,128], index: 5, kind: output, shape index: {1}]  }
   0x1   :  { %13 = vsyncpa [#allocation3 + $0x1], 0 }
   0x2   :  { %14 = vsyncpa [#allocation6], 0 }
   0x3   :  { %15 = vsyncpa [#allocation4], 0 }
   0x4   :  { %17 = vsyncpa [#allocation4 + $0x1], 0 }
   0x5   :  { %18 = vsyncpa [#allocation9], 0 }
   0x6   :  { %20 = vsyncpa [#allocation9 + $0x1], 0  ;;  %s6208_s18 = smov 0   ;;  %s6210_s19 = smov 0  }
   0x7   :  { %s6212_s20 = smov 0   ;;  %s6214_s21 = smov 0  }
   0x8 LB: > { %s6229_s22 = sadd.s32 4294967295, %s6167_s21   ;;  %s3757_s23 = sadd.s32 4294967294, %s6167_s21   ;;  %s6167_s21 = sphi %s6214_s21, %s7693_s21   ;;  %s6163_s20 = sphi %s6212_s20, %s7692_s20   ;;  %s6159_s19 = sphi %s6210_s19, %s7691_s19   ;;  %s6155_s18 = sphi %s6208_s18, %s7690_s18  }
   0x9   : > { %p46_p0 = scmp.ne.s32.totalorder %s6159_s19, %s6155_s18  ;;  %p7631_p1 = scmp.eq.s32.totalorder %s6229_s22, 0 }
   0xa   : > { %p139_p3 = scmp.eq.s32.totalorder %s3757_s23, 1  ;;  %p3758_p5 = scmp.ge.s32.totalorder %s6167_s21, 1 }
   0xb   : > { %p6238_p4 = por %p7631_p1, %p46_p0  ;;  %p172_p7 = scmp.lt.s32.totalorder %s6167_s21, 3 }
   0xc   : > { %p6243_p6 = por %p139_p3, %p46_p0  ;;  %s6169_s27 = smov [#allocation5]  }
   0xd   : > { %s7649_s24 = scalar_select %p6238_p4, 1, 0 }
   0xe   : > { %s7650_s25 = scalar_select %p6243_p6, 1, 0 }
   0xf   : > { %p6248_p8 = pnand %p3758_p5, %p172_p7  ;;  %s184_s28 = sshll.u32 %s6169_s27, 4  ;;  %s6252_s28 = int_to_ptr.vmem [resolvable:$true] %s184_s28 }
  0x10   : > { %s6264_s30 = sadd.s32 1, %s6167_s21   ;;  %s33_s6 = sadd.s32 1, %s6163_s20 }
  0x11   : > { %s7651_s26 = scalar_select %p6248_p8, 1, 0 }
  0x12   : > { %p5950_p9 = pneg %p6248_p8  ;;  %s30_s7 = ssub.s32 %s6167_s21, %s6264_s30 }
  0x13   : > { %s6007_s10 = scalar_lea.hbm %s7626_s1, 18432 }
  0x14   : > { %p6259_p11 = pnand %p5950_p9, %p7631_p1  ;;  %p6008_p12 = scmp.ne.s32.totalorder %s7626_s1, %s6007_s10 }
  0x15   : > { %p6014_p5 = scmp.lt.u32.totalorder %s6007_s10, %s7626_s1 }
  0x16   : > { %p6009_p13 = pneg %p6259_p11 }
  0x18   : > { %p6010_p0 = pnand %p6009_p13, %p6008_p12 }
  0x1a   : > { %p6011_p3 = pneg %p6010_p0 }
  0x1c   : > { %p6016_p7 = pnand %p6014_p5, %p6011_p3 }
  0x1e   : > { %6019 = shalt.err (!%p6016_p7)
}
  0x1f   : > { %s6020_s15 = scalar_lea.vmem %s6252_s28, 18432  ;;  %p6028_p2 = scmp.lt.s32.totalorder %s6252_s28, %s6252_s28 }
  0x20   : > { %p6021_p9 = scmp.ne.s32.totalorder %s6252_s28, %s6020_s15  ;;  %p6029_p6 = scmp.lt.s32.totalorder %s6020_s15, %s6020_s15 }
  0x22   : > { %p6023_p10 = pnand %p6021_p9, %p6009_p13  ;;  %p6030_p4 = por %p6029_p6, %p6028_p2 }
  0x24   : > { %p6024_p1 = pneg %p6023_p10 }
  0x26   : > { %p6031_p8 = pnand %p6030_p4, %p6024_p1 }
  0x28   : > { %6034 = shalt.err (!%p6031_p8)
}
  0x29   : > { %s6170_s16 = smov 128   ;;  %s6171_s17 = smov 8  }
  0x2a   : > { %5953 = dma.hbm_to_vmem [thread:$0]  (!%p6259_p11), %s7626_s1, 18432, %s6252_s28, [#allocation6], %s6170_s16, %s6170_s16, %s6171_s17  }
  0x2b   : > { %p31_p1 = scmp.eq.s32.totalorder %s30_s7, 0  ;;  %p40_p2 = scmp.ne.s32.totalorder %s6163_s20, %s6159_s19 }
  0x2c   : > { %p41_p4 = scmp.eq.s32.totalorder %s6167_s21, 0  ;;  %p5966_p6 = scmp.lt.s32.totalorder %s6167_s21, 2 }
  0x2d   : > { %s6298_s8 = scalar_select %p31_p1, %s6163_s20, %s33_s6  }
  0x2e   : > { %p42_p8 = por %p41_p4, %p40_p2  ;;  %p7653_p10 = scmp.eq.s32.totalorder %s6229_s22, 1 }
  0x2f   : > { %s204_s29 = sand.u32 1, %s6163_s20   ;;  %s3960_s10 = sshll.u32 %s6167_s21, 12 }
  0x30   : > { %p6302_p12 = por %p7653_p10, %p40_p2  ;;  %s3761_s11 = sshll.u32 %s204_s29, 8 }
  0x31   : > { %s6311_s14 = scalar_lea.hbm %s7625_s0, %s3960_s10  ;;  %s208_s28 = scalar_lea.vmem [#allocation2], %s3761_s11 }
  0x32   : > { %s215_s6 = sshll.u32 %s208_s28, 4  ;;  %p6313_p11 = pnand %p5966_p6, %p42_p8  ;;  %s6317_s6 = int_to_ptr.vmem [resolvable:$true] %s215_s6 }
  0x33   : > { %s6319_s15 = scalar_lea.sflag [#allocation3], %s204_s29  ;;  %s6035_s23 = scalar_lea.hbm %s6311_s14, 4096 }
  0x34   : > { %p6036_p13 = scmp.ne.s32.totalorder %s6311_s14, %s6035_s23  ;;  %p6037_p0 = pneg %p6313_p11 }
  0x35   : > { %s6040_s11 = scalar_lea.hbm %s7625_s0, 8192  ;;  %p6041_p7 = scmp.lt.u32.totalorder %s6311_s14, %s7625_s0 }
  0x36   : > { %p6038_p3 = pnand %p6037_p0, %p6036_p13  ;;  %p6042_p9 = scmp.lt.u32.totalorder %s6040_s11, %s6035_s23 }
  0x37   : > { %p6044_p2 = scmp.lt.u32.totalorder %s6035_s23, %s6311_s14 }
  0x38   : > { %p6039_p5 = pneg %p6038_p3  ;;  %p6043_p1 = por %p6042_p9, %p6041_p7 }
  0x3a   : > { %p6045_p4 = por %p6044_p2, %p6043_p1 }
  0x3c   : > { %p6046_p6 = pnand %p6045_p4, %p6039_p5 }
  0x3e   : > { %6049 = shalt.err (!%p6046_p6)
}
  0x3f   : > { %s6050_s29 = scalar_lea.vmem %s6317_s6, 4096  ;;  %s6172_s28 = smov [#allocation2]  }
  0x40   : > { %p6051_p8 = scmp.ne.s32.totalorder %s6317_s6, %s6050_s29  ;;  %s6055_s27 = sshll.u32 %s6172_s28, 4  ;;  %s6056_s27 = int_to_ptr.vmem [resolvable:$false] %s6055_s27 }
  0x41   : > { %s6057_s10 = scalar_lea.vmem %s6056_s27, 8192  ;;  %p6058_p3 = scmp.lt.s32.totalorder %s6317_s6, %s6056_s27 }
  0x42   : > { %p6053_p10 = pnand %p6051_p8, %p6037_p0  ;;  %p6059_p7 = scmp.lt.s32.totalorder %s6057_s10, %s6050_s29 }
  0x44   : > { %p6054_p13 = pneg %p6053_p10  ;;  %p6060_p9 = por %p6059_p7, %p6058_p3 }
  0x46   : > { %p6061_p1 = pnand %p6060_p9, %p6054_p13 }
  0x48   : > { %6064 = shalt.err (!%p6061_p1)
}
  0x49   : > { %5957 = dma.hbm_to_vmem [thread:$0]  (!%p6313_p11), %s6311_s14, 4096, %s6317_s6, %s6319_s15, %s6170_s16, %s6170_s16, %s6171_s17  }
  0x4a   : > { %p7656_p0 = scmp.ne.s32.totalorder %s7651_s26, 0 }
  0x4c   : > { %227 = sbr.rel (%p7656_p0) target bundleno = 668 (0x29c), region = 36 }
  0x53   : > { %s6353_s23 = sand.u32 1, %s6159_s19   ;;  %p7657_p5 = scmp.ne.s32.totalorder %s7649_s24, 0 }
  0x54   : > { %s3765_s11 = sshll.u32 %s6353_s23, 8  ;;  %s230_s12 = scalar_lea.sflag [#allocation3], %s6353_s23 }
  0x55   : > { %s6359_s7 = scalar_lea.vmem [#allocation2], %s3765_s11 }
  0x56   : > { %6138 = dma.done.wait (%p7657_p5), %s230_s12, 4096  }
  0x57   : > { %6140 = vsyncadd (%p7657_p5), %s230_s12, 4294963200  ;;  %p7658_p11 = scmp.eq.s32.totalorder %s6229_s22, 0 }
  0x59   : > { %6142 = dma.done.wait (%p7658_p11), [#allocation6], 18432   ;;  %p7659_p2 = pmov %p7658_p11 }
  0x5a   : > { %v379_v0 = vlaneseq  ;;  %v383_v3 = vld [vmem:[#allocation5 + $0x200] sm:$0xff]  ;;  %v384_v4 = vld [vmem:[#allocation5 + $0x208] sm:$0xff]  ;;  %v6173_v6 = vmov 0.0   ;;  %v385_v10 = vld [vmem:[#allocation5 + $0x210] sm:$0xff]  ;;  %s7463_s14 = scalar_lea.vmem [#allocation7], %s3765_s11  ;;  %s3961_s6 = sshll.u32 %s6229_s22, 12 }
  0x5b   : > { %6144 = vsyncadd (%p7659_p2), [#allocation6], 4294948864  ;;  %v980_v5 = vld [vmem:[#allocation5 + $0x380] sm:$0xff]  ;;  %v5084_v8 = vpack.c.bf16 %v384_v4, %v383_v3  ;;  %v981_v9 = vld [vmem:[#allocation5 + $0x388] sm:$0xff]  ;;  %s3629_s15 = sshll.u32 %s7463_s14, 4  ;;  %s7536_s28 = scalar_lea.hbm %s7629_s4, %s3961_s6  ;;  %s7538_s15 = int_to_ptr.vmem [resolvable:$true] %s3629_s15 }
  0x5c   : > { %v6369_v1 = vshrl.u32 %v379_v0, 7  ;;  %v386_v11 = vld [vmem:[#allocation5 + $0x218] sm:$0xff]  ;;  %v5148_v12 = vpack.c.bf16 %v981_v9, %v980_v5  ;;  %v982_v14 = vld [vmem:[#allocation5 + $0x390] sm:$0xff]  ;;  %v387_v16 = vld [vmem:[#allocation5 + $0x220] sm:$0xff]  ;;  %s3611_s27 = scalar_lea.sflag [#allocation4], %s6353_s23  ;;  %s6065_s10 = scalar_lea.vmem %s7538_s15, 4096 }
  0x5d   : > { %v5088_v13 = vpack.c.bf16 %v386_v11, %v385_v10  ;;  %v983_v15 = vld [vmem:[#allocation5 + $0x398] sm:$0xff]  ;;  %5085 = vmatprep.subr.bf16.mxu1 %v5084_v8  ;;  %v388_v18 = vld [vmem:[#allocation5 + $0x228] sm:$0xff]  ;;  %v984_v19 = vld [vmem:[#allocation5 + $0x3a0] sm:$0xff]  ;;  %p6066_p4 = scmp.ne.s32.totalorder %s7538_s15, %s6065_s10  ;;  %s6174_s11 = smov [#allocation7]  }
  0x5e   : > { %v381_v2 = vadd.s32 8, %v6369_v1  ;;  %v5152_v17 = vpack.c.bf16 %v983_v15, %v982_v14  ;;  %v985_v20 = vld [vmem:[#allocation5 + $0x3a8] sm:$0xff]  ;;  %5149 = vmatprep.subr.bf16.mxu0 %v5148_v12  ;;  %5087 = vmatpush3.bf16.msra.mxu1 %v5084_v8  ;;  %v5092_v21 = vpack.c.bf16 %v388_v18, %v387_v16  ;;  %v389_v23 = vld [vmem:[#allocation5 + $0x230] sm:$0xff]  ;;  %v390_v24 = vld [vmem:[#allocation5 + $0x238] sm:$0xff]  ;;  %vm1366_vm1 = vcmp.gt.s32.totalorder %v6369_v1, 0  ;;  %s6069_s12 = sshll.u32 %s6174_s11, 4  ;;  %s6070_s12 = int_to_ptr.vmem [resolvable:$false] %s6069_s12 }
  0x5f   : > { %5151 = vmatpush3.bf16.msra.mxu0 %v5148_v12  ;;  %5089 = vmatprep.subr.bf16.mxu1 %v5088_v13  ;;  %v5156_v22 = vpack.c.bf16 %v985_v20, %v984_v19  ;;  %v986_v25 = vld [vmem:[#allocation5 + $0x3b0] sm:$0xff]  ;;  %v987_v26 = vld [vmem:[#allocation5 + $0x3b8] sm:$0xff]  ;;  %v5096_v27 = vpack.c.bf16 %v390_v24, %v389_v23  ;;  %v391_v28 = vld [vmem:[#allocation5 + $0x240] sm:$0xff]  ;;  %vm1333_vm2 = vcmp.lt.s32.totalorder %v6369_v1, 1  ;;  %vm2417_vm3 = vcmp.lt.s32.totalorder %v6369_v1, 7  ;;  %p6067_p6 = pnand %p6066_p4, %p6302_p12  ;;  %p6072_p10 = scmp.lt.s32.totalorder %s7538_s15, %s6070_s12 }
  0x60   : > { %vm2451_vm0 = vcmp.lt.s32.totalorder %v381_v2, 15  ;;  %5153 = vmatprep.subr.bf16.mxu0 %v5152_v17  ;;  %v392_v29 = vld [vmem:[#allocation5 + $0x248] sm:$0xff]  ;;  %v5160_v30 = vpack.c.bf16 %v987_v26, %v986_v25  ;;  %v988_v31 = vld [vmem:[#allocation5 + $0x3c0] sm:$0xff]  ;;  %v273_v36 = vld [vmem:[%s6359_s7 + $0x10] sm:$0xff] }
  0x61   : > { %v6373_v7 = vsel %vm2451_vm0, 1.0, %v6173_v6  ;;  %v989_v32 = vld [vmem:[#allocation5 + $0x3c8] sm:$0xff]  ;;  %v6378_v33 = vld [vmem:[%s7627_s2] ss:$0 sm:$0xff]  ;;  %v5100_v39 = vpack.c.bf16 %v392_v29, %v391_v28  ;;  %v393_v41 = vld [vmem:[#allocation5 + $0x250] sm:$0xff]  ;;  %p6068_p8 = pneg %p6067_p6 }
  0x62   : > { %7660 = vst [vmem:[#allocation14_spill] sm:$0xff] %v6373_v7  ;;  %5091 = vmatpush3.bf16.msra.mxu1 %v5088_v13  ;;  %v6383_v34 = vld [vmem:[%s7628_s3] ss:$0 sm:$0xff]  ;;  %v311_v38 = vmul.f32 %v6378_v33, %v273_v36  ;;  %v5164_v40 = vpack.c.bf16 %v989_v32, %v988_v31  ;;  %v394_v42 = vld [vmem:[#allocation5 + $0x258] sm:$0xff]  ;;  %v990_v45 = vld [vmem:[#allocation5 + $0x3d0] sm:$0xff] }
  0x63   : > { %5155 = vmatpush3.bf16.msra.mxu0 %v5152_v17  ;;  %5093 = vmatprep.subr.bf16.mxu1 %v5092_v21  ;;  %v271_v35 = vld [vmem:[%s6359_s7] sm:$0xff]  ;;  %v991_v46 = vld [vmem:[#allocation5 + $0x3d8] sm:$0xff]  ;;  %v5104_v47 = vpack.c.bf16 %v394_v42, %v393_v41  ;;  %v396_v50 = vld [vmem:[#allocation5 + $0x268] sm:$0xff] }
  0x64   : > { %5157 = vmatprep.subr.bf16.mxu0 %v5156_v22  ;;  %v309_v37 = vmul.f32 %v6378_v33, %v271_v35  ;;  %v6393_v44 = vadd.f32 %v6383_v34, %v311_v38  ;;  %v5168_v48 = vpack.c.bf16 %v991_v46, %v990_v45  ;;  %v395_v49 = vld [vmem:[#allocation5 + $0x260] sm:$0xff]  ;;  %v993_v52 = vld [vmem:[#allocation5 + $0x3e8] sm:$0xff]  ;;  %v397_v55 = vld [vmem:[#allocation5 + $0x270] sm:$0xff] }
  0x65   : > { %v992_v51 = vld [vmem:[#allocation5 + $0x3e0] sm:$0xff]  ;;  %v5108_v53 = vpack.c.bf16 %v396_v50, %v395_v49  ;;  %v398_v56 = vld [vmem:[#allocation5 + $0x278] sm:$0xff]  ;;  %v272_v57 = vld [vmem:[%s6359_s7 + $0x8] sm:$0xff] }
  0x66   : > { %5095 = vmatpush3.bf16.msra.mxu1 %v5092_v21  ;;  %v6390_v43 = vadd.f32 %v6383_v34, %v309_v37  ;;  %4571 = vmatprep.mubr.f32.mxu0 %v6393_v44  ;;  %v5172_v54 = vpack.c.bf16 %v993_v52, %v992_v51  ;;  %v994_v58 = vld [vmem:[#allocation5 + $0x3f0] sm:$0xff]  ;;  %v995_v59 = vld [vmem:[#allocation5 + $0x3f8] sm:$0xff]  ;;  %v5112_v61 = vpack.c.bf16 %v398_v56, %v397_v55  ;;  %v657_v63 = vld [vmem:[#allocation5 + $0x80] sm:$0xff] }
  0x67   : > { %5159 = vmatpush3.bf16.msra.mxu0 %v5156_v22  ;;  %5097 = vmatprep.subr.bf16.mxu1 %v5096_v27  ;;  %v274_v60 = vld [vmem:[%s6359_s7 + $0x18] sm:$0xff]  ;;  %v310_v62 = vmul.f32 %v6378_v33, %v272_v57  ;;  %v275_v0 = vld [vmem:[%s6359_s7 + $0x20] sm:$0xff]  ;;  %v5176_v2 = vpack.c.bf16 %v995_v59, %v994_v58  ;;  %v658_v3 = vld [vmem:[#allocation5 + $0x88] sm:$0xff] }
  0x68   : > { %5161 = vmatprep.subr.bf16.mxu0 %v5160_v30  ;;  %4414 = vmatprep.mubr.f32.mxu1 %v6390_v43  ;;  %v276_v4 = vld [vmem:[%s6359_s7 + $0x28] sm:$0xff]  ;;  %v1742_v5 = vld [vmem:[#allocation5] sm:$0xff]  ;;  %v312_v8 = vmul.f32 %v6378_v33, %v274_v60  ;;  %v277_v10 = vld [vmem:[%s6359_s7 + $0x30] sm:$0xff]  ;;  %v313_v12 = vmul.f32 %v6378_v33, %v275_v0  ;;  %v5116_v16 = vpack.c.bf16 %v658_v3, %v657_v63 }
  0x69   : > { %v1743_v9 = vld [vmem:[#allocation5 + $0x8] sm:$0xff]  ;;  %v297_v14 = vld [vmem:[%s6359_s7 + $0xd0] sm:$0xff]  ;;  %v6409_v15 = vadd.f32 %v6383_v34, %v310_v62  ;;  %v314_v17 = vmul.f32 %v6378_v33, %v276_v4  ;;  %v298_v18 = vld [vmem:[%s6359_s7 + $0xd8] sm:$0xff]  ;;  %v315_v21 = vmul.f32 %v6378_v33, %v277_v10 }
  0x6a   : > { %5099 = vmatpush3.bf16.msra.mxu1 %v5096_v27  ;;  %v296_v11 = vld [vmem:[%s6359_s7 + $0xc8] sm:$0xff]  ;;  %v299_v19 = vld [vmem:[%s6359_s7 + $0xe0] sm:$0xff]  ;;  %v5212_v20 = vpack.c.bf16 %v1743_v9, %v1742_v5  ;;  %v335_v23 = vmul.f32 %v6378_v33, %v297_v14  ;;  %v301_v25 = vld [vmem:[%s6359_s7 + $0xf0] sm:$0xff]  ;;  %v6422_v26 = vadd.f32 %v6383_v34, %v312_v8  ;;  %v336_v29 = vmul.f32 %v6378_v33, %v298_v18 }
  0x6b   : > { %5163 = vmatpush3.bf16.msra.mxu0 %v5160_v30  ;;  %5101 = vmatprep.subr.bf16.mxu1 %v5100_v39  ;;  %v334_v13 = vmul.f32 %v6378_v33, %v296_v11  ;;  %v300_v24 = vld [vmem:[%s6359_s7 + $0xe8] sm:$0xff]  ;;  %v659_v27 = vld [vmem:[#allocation5 + $0x90] sm:$0xff]  ;;  %v660_v28 = vld [vmem:[#allocation5 + $0x98] sm:$0xff]  ;;  %v337_v30 = vmul.f32 %v6378_v33, %v299_v19  ;;  %v6429_v35 = vadd.f32 %v6383_v34, %v313_v12 }
  0x6c   : > { %5165 = vmatprep.subr.bf16.mxu0 %v5164_v40  ;;  %v338_v31 = vmul.f32 %v6378_v33, %v300_v24  ;;  %v302_v32 = vld [vmem:[%s6359_s7 + $0xf8] sm:$0xff]  ;;  %v1744_v36 = vld [vmem:[#allocation5 + $0x10] sm:$0xff]  ;;  %v6432_v38 = vadd.f32 %v6383_v34, %v335_v23  ;;  %v6438_v42 = vadd.f32 %v6383_v34, %v336_v29  ;;  %v661_v52 = vld [vmem:[#allocation5 + $0xa0] sm:$0xff]  ;;  %v6462_v58 = vadd.f32 %v6383_v34, %v315_v21 }
  0x6d   : > { %v6416_v22 = vadd.f32 %v6383_v34, %v334_v13  ;;  %7661 = vst [vmem:[#allocation15_spill] sm:$0xff] %v6429_v35  ;;  %v1745_v37 = vld [vmem:[#allocation5 + $0x18] sm:$0xff]  ;;  %v6441_v45 = vadd.f32 %v6383_v34, %v337_v30  ;;  %v1746_v56 = vld [vmem:[#allocation5 + $0x20] sm:$0xff]  ;;  %v1747_v57 = vld [vmem:[#allocation5 + $0x28] sm:$0xff] }
  0x6e   : > { %5103 = vmatpush3.bf16.msra.mxu1 %v5100_v39  ;;  %v339_v39 = vmul.f32 %v6378_v33, %v301_v25  ;;  %v278_v41 = vld [vmem:[%s6359_s7 + $0x38] sm:$0xff]  ;;  %7662 = vst [vmem:[#allocation16_spill] sm:$0xff] %v6438_v42  ;;  %v6444_v46 = vadd.f32 %v6383_v34, %v338_v31  ;;  %v5216_v51 = vpack.c.bf16 %v1745_v37, %v1744_v36  ;;  %7666 = vst [vmem:[#allocation20_spill] sm:$0xff] %v6462_v58  ;;  %v280_v60 = vld [vmem:[%s6359_s7 + $0x48] sm:$0xff] }
  0x6f   : > { %5167 = vmatpush3.bf16.msra.mxu0 %v5164_v40  ;;  %5105 = vmatprep.subr.bf16.mxu1 %v5104_v47  ;;  %v340_v40 = vmul.f32 %v6378_v33, %v302_v32  ;;  %7663 = vst [vmem:[#allocation17_spill] sm:$0xff] %v6441_v45  ;;  %v316_v55 = vmul.f32 %v6378_v33, %v278_v41  ;;  %v663_v0 = vld [vmem:[#allocation5 + $0xb0] sm:$0xff]  ;;  %v1749_v8 = vld [vmem:[#allocation5 + $0x38] sm:$0xff]  ;;  %v283_v12 = vld [vmem:[%s6359_s7 + $0x60] sm:$0xff] }
  0x70   : > { %5169 = vmatprep.subr.bf16.mxu0 %v5168_v48  ;;  %7664 = vst [vmem:[#allocation18_spill] sm:$0xff] %v6444_v46  ;;  %v6448_v49 = vadd.f32 %v6383_v34, %v339_v39  ;;  %v5220_v63 = vpack.c.bf16 %v1747_v57, %v1746_v56  ;;  %v318_v4 = vmul.f32 %v6378_v33, %v280_v60  ;;  %v1748_v5 = vld [vmem:[#allocation5 + $0x30] sm:$0xff]  ;;  %v282_v11 = vld [vmem:[%s6359_s7 + $0x58] sm:$0xff]  ;;  %v1751_v21 = vld [vmem:[#allocation5 + $0x48] sm:$0xff] }
  0x71   : > { %v6451_v50 = vadd.f32 %v6383_v34, %v340_v40  ;;  %v6471_v3 = vadd.f32 %v6383_v34, %v316_v55  ;;  %v5224_v14 = vpack.c.bf16 %v1749_v8, %v1748_v5  ;;  %v320_v19 = vmul.f32 %v6378_v33, %v282_v11  ;;  %v284_v25 = vld [vmem:[%s6359_s7 + $0x68] sm:$0xff]  ;;  %v667_v30 = vld [vmem:[#allocation5 + $0xd0] sm:$0xff]  ;;  %v668_v31 = vld [vmem:[#allocation5 + $0xd8] sm:$0xff] }
  0x72   : > { %5107 = vmatpush3.bf16.msra.mxu1 %v5104_v47  ;;  %v5120_v47 = vpack.c.bf16 %v660_v28, %v659_v27  ;;  %v6485_v18 = vadd.f32 %v6383_v34, %v318_v4  ;;  %v321_v24 = vmul.f32 %v6378_v33, %v283_v12  ;;  %v285_v27 = vld [vmem:[%s6359_s7 + $0x70] sm:$0xff]  ;;  %v322_v36 = vmul.f32 %v6378_v33, %v284_v25  ;;  %v1753_v39 = vld [vmem:[#allocation5 + $0x58] sm:$0xff]  ;;  %v670_v55 = vld [vmem:[#allocation5 + $0xe8] sm:$0xff] }
  0x73   : > { %5171 = vmatpush3.bf16.msra.mxu0 %v5168_v48  ;;  %5109 = vmatprep.subr.bf16.mxu1 %v5108_v53  ;;  %v279_v48 = vld [vmem:[%s6359_s7 + $0x40] sm:$0xff]  ;;  %7667 = vst [vmem:[#allocation21_spill] sm:$0xff] %v6471_v3  ;;  %v6499_v32 = vadd.f32 %v6383_v34, %v320_v19  ;;  %v1752_v37 = vld [vmem:[#allocation5 + $0x50] sm:$0xff]  ;;  %v323_v41 = vmul.f32 %v6378_v33, %v285_v27  ;;  %v1755_v60 = vld [vmem:[#allocation5 + $0x68] sm:$0xff] }
  0x74   : > { %5173 = vmatprep.subr.bf16.mxu0 %v5172_v54  ;;  %v317_v59 = vmul.f32 %v6378_v33, %v279_v48  ;;  %7669 = vst [vmem:[#allocation23_spill] sm:$0xff] %v6485_v18  ;;  %v6504_v40 = vadd.f32 %v6383_v34, %v321_v24  ;;  %v287_v48 = vld [vmem:[%s6359_s7 + $0x80] sm:$0xff]  ;;  %v6513_v56 = vadd.f32 %v6383_v34, %v322_v36  ;;  %v671_v5 = vld [vmem:[#allocation5 + $0xf0] sm:$0xff]  ;;  %v672_v8 = vld [vmem:[#allocation5 + $0xf8] sm:$0xff] }
  0x75   : > { %v1756_v12 = vld [vmem:[#allocation5 + $0x70] sm:$0xff]  ;;  %v291_v19 = vld [vmem:[%s6359_s7 + $0xa0] sm:$0xff]  ;;  %v1406_v25 = vld [vmem:[#allocation5 + $0x188] sm:$0xff] }
  0x76   : > { %5111 = vmatpush3.bf16.msra.mxu1 %v5108_v53  ;;  %v662_v53 = vld [vmem:[#allocation5 + $0xa8] sm:$0xff]  ;;  %v6476_v9 = vadd.f32 %v6383_v34, %v317_v59  ;;  %7671 = vst [vmem:[#allocation25_spill] sm:$0xff] %v6504_v40  ;;  %v1754_v59 = vld [vmem:[#allocation5 + $0x60] sm:$0xff]  ;;  %v329_v36 = vmul.f32 %v6378_v33, %v291_v19 }
  0x77   : > { %5175 = vmatpush3.bf16.msra.mxu0 %v5172_v54  ;;  %5113 = vmatprep.subr.bf16.mxu1 %v5112_v61  ;;  %v6456_v54 = vadd.f32 %v6383_v34, %v314_v17  ;;  %v5124_v62 = vpack.c.bf16 %v662_v53, %v661_v52  ;;  %v666_v17 = vld [vmem:[#allocation5 + $0xc8] sm:$0xff]  ;;  %v5232_v52 = vpack.c.bf16 %v1753_v39, %v1752_v37  ;;  %v669_v53 = vld [vmem:[#allocation5 + $0xe0] sm:$0xff]  ;;  %v293_v39 = vld [vmem:[%s6359_s7 + $0xb0] sm:$0xff] }
  0x78   : > { %5177 = vmatprep.subr.bf16.mxu0 %v5176_v2  ;;  %7668 = vst [vmem:[#allocation22_spill] sm:$0xff] %v6476_v9  ;;  %v5236_v4 = vpack.c.bf16 %v1755_v60, %v1754_v59  ;;  %v1405_v24 = vld [vmem:[#allocation5 + $0x180] sm:$0xff]  ;;  %v292_v37 = vld [vmem:[%s6359_s7 + $0xa8] sm:$0xff] }
  0x79   : > { %7665 = vst [vmem:[#allocation19_spill] sm:$0xff] %v6456_v54 }
  0x7a   : > { %5115 = vmatpush3.bf16.msra.mxu1 %v5112_v61  ;;  %v281_v61 = vld [vmem:[%s6359_s7 + $0x50] sm:$0xff] }
  0x7b   : > { %5179 = vmatpush3.bf16.msra.mxu0 %v5176_v2  ;;  %5117 = vmatprep.subr.bf16.mxu1 %v5116_v16  ;;  %v664_v2 = vld [vmem:[#allocation5 + $0xb8] sm:$0xff]  ;;  %v319_v10 = vmul.f32 %v6378_v33, %v281_v61  ;;  %v6518_v61 = vadd.f32 %v6383_v34, %v323_v41  ;;  %v6551_v41 = vpack.c.bf16 %v1406_v25, %v1405_v24  ;;  %v2066_v24 = vld [vmem:[#allocation5 + $0x310] sm:$0xff] }
  0x7c   : > { %5213 = vmatprep.subr.bf16.mxu0 %v5212_v20  ;;  %v5128_v13 = vpack.c.bf16 %v664_v2, %v663_v0  ;;  %v289_v0 = vld [vmem:[%s6359_s7 + $0x90] sm:$0xff]  ;;  %v5140_v2 = vpack.c.bf16 %v670_v55, %v669_v53  ;;  %v331_v53 = vmul.f32 %v6378_v33, %v293_v39  ;;  %v294_v55 = vld [vmem:[%s6359_s7 + $0xb8] sm:$0xff] }
  0x7d   : > { %4415 = vmatmul.mubr.f32.vlgmr.msra.gmra.mrb[0].mxu1 %v6409_v15  ;;  %v6490_v23 = vadd.f32 %v6383_v34, %v319_v10  ;;  %v332_v60 = vmul.f32 %v6378_v33, %v294_v55  ;;  %v2067_v25 = vld [vmem:[#allocation5 + $0x318] sm:$0xff]  ;;  %v2068_v55 = vld [vmem:[#allocation5 + $0x320] sm:$0xff] }
  0x7e   : > { %4572 = vmatmul.mubr.f32.vlgmr.msra.gmra.mrb[0].mxu0 %v6422_v26  ;;  %5119 = vmatpush3.bf16.msra.mxu1 %v5116_v16  ;;  %v665_v16 = vld [vmem:[#allocation5 + $0xc0] sm:$0xff]  ;;  %v5248_v39 = vpack.c.bf16 %v2067_v25, %v2066_v24  ;;  %v1410_v24 = vld [vmem:[#allocation5 + $0x1a8] sm:$0xff] }
  0x7f   : > { %4417 = vmatprep.mubr.f32.mxu1 %v6393_v44  ;;  %4574 = vmatprep.mubr.f32.mxu0 %v6429_v35  ;;  %7670 = vst [vmem:[#allocation24_spill] sm:$0xff] %v6490_v23  ;;  %v5132_v28 = vpack.c.bf16 %v666_v17, %v665_v16  ;;  %v327_v16 = vmul.f32 %v6378_v33, %v289_v0  ;;  %v290_v17 = vld [vmem:[%s6359_s7 + $0x98] sm:$0xff] }
  0x80   : > { %5215 = vmatpush3.bf16.msra.mxu0 %v5212_v20  ;;  %5121 = vmatprep.subr.bf16.mxu1 %v5120_v47  ;;  %v1750_v20 = vld [vmem:[#allocation5 + $0x40] sm:$0xff]  ;;  %v6587_v0 = vadd.f32 %v6383_v34, %v332_v60 }
  0x81   : > { %4418 = vmatmul.mubr.f32.gmra.mrb[2].mxu1 %v6422_v26  ;;  %5217 = vmatprep.subr.bf16.mxu0 %v5216_v51  ;;  %v5228_v29 = vpack.c.bf16 %v1751_v21, %v1750_v20  ;;  %v5144_v20 = vpack.c.bf16 %v672_v8, %v671_v5 }
  0x82   : > { %4575 = vmatmul.mubr.f32.gmra.mrb[2].mxu0 %v6456_v54  ;;  %4420 = vmatprep.mubr.f32.mxu1 %v6429_v35 }
  0x83   : > { %4577 = vmatprep.mubr.f32.mxu0 %v6462_v58  ;;  %5123 = vmatpush3.bf16.msra.mxu1 %v5120_v47  ;;  %v286_v47 = vld [vmem:[%s6359_s7 + $0x78] sm:$0xff] }
  0x84   : > { %5219 = vmatpush3.bf16.msra.mxu0 %v5216_v51  ;;  %5125 = vmatprep.subr.bf16.mxu1 %v5124_v62  ;;  %v5136_v51 = vpack.c.bf16 %v668_v31, %v667_v30  ;;  %v324_v57 = vmul.f32 %v6378_v33, %v286_v47  ;;  %v2065_v30 = vld [vmem:[#allocation5 + $0x308] sm:$0xff]  ;;  %v6546_v31 = vadd.f32 %v6383_v34, %v327_v16  ;;  %v1318_v16 = vrot.slane %v6422_v26, 7 }
  0x85   : > { %4421 = vmatmul.mubr.f32.gmra.mrb[4].mxu1 %v6456_v54  ;;  %5221 = vmatprep.subr.bf16.mxu0 %v5220_v63 }
  0x86   : > { %4578 = vmatmul.mubr.f32.gmra.mrb[4].mxu0 %v6471_v3  ;;  %4423 = vmatprep.mubr.f32.mxu1 %v6462_v58  ;;  %v6527_v10 = vadd.f32 %v6383_v34, %v324_v57  ;;  %v295_v57 = vld [vmem:[%s6359_s7 + $0xc0] sm:$0xff] }
  0x87   : > { %4580 = vmatprep.mubr.f32.mxu0 %v6476_v9  ;;  %5127 = vmatpush3.bf16.msra.mxu1 %v5124_v62  ;;  %v325_v62 = vmul.f32 %v6378_v33, %v287_v48 }
  0x88   : > { %5223 = vmatpush3.bf16.msra.mxu0 %v5220_v63  ;;  %5129 = vmatprep.subr.bf16.mxu1 %v5128_v13  ;;  %v288_v63 = vld [vmem:[%s6359_s7 + $0x88] sm:$0xff]  ;;  %s6071_s7 = scalar_lea.vmem %s6070_s12, 8192 }
  0x89   : > { %4424 = vmatmul.mubr.f32.gmra.mrb[6].mxu1 %v6471_v3  ;;  %5225 = vmatprep.subr.bf16.mxu0 %v5224_v14  ;;  %v326_v11 = vmul.f32 %v6378_v33, %v288_v63  ;;  %v333_v63 = vmul.f32 %v6378_v33, %v295_v57  ;;  %v2069_v57 = vld [vmem:[#allocation5 + $0x328] sm:$0xff]  ;;  %p6073_p13 = scmp.lt.s32.totalorder %s6071_s7, %s6065_s10 }
  0x8a   : > { %4581 = vmatmul.mubr.f32.gmra.mrb[6].mxu0 %v6485_v18  ;;  %4426 = vmatprep.mubr.f32.mxu1 %v6476_v9 }
  0x8b   : > { %4583 = vmatprep.mubr.f32.mxu0 %v6490_v23  ;;  %5131 = vmatpush3.bf16.msra.mxu1 %v5128_v13  ;;  %v1757_v13 = vld [vmem:[#allocation5 + $0x78] sm:$0xff]  ;;  %v6541_v27 = vadd.f32 %v6383_v34, %v326_v11  ;;  %v1301_v11 = vrot.slane %v6390_v43, 7  ;;  %p6074_p3 = por %p6073_p13, %p6072_p10 }
  0x8c   : > { %5227 = vmatpush3.bf16.msra.mxu0 %v5224_v14  ;;  %5133 = vmatprep.subr.bf16.mxu1 %v5132_v28  ;;  %v6532_v14 = vadd.f32 %v6383_v34, %v325_v62  ;;  %v5240_v21 = vpack.c.bf16 %v1757_v13, %v1756_v12  ;;  %v6580_v62 = vadd.f32 %v6383_v34, %v331_v53  ;;  %v1317_v12 = vrot.slane %v6409_v15, 7  ;;  %v1408_v53 = vld [vmem:[#allocation5 + $0x198] sm:$0xff] }
  0x8d   : > { %4427 = vmatmul.mubr.f32.gmra.mrb[8].mxu1 %v6485_v18  ;;  %5229 = vmatprep.subr.bf16.mxu0 %v5228_v29  ;;  %v1302_v13 = vrot.slane %v6393_v44, 7  ;;  %p6075_p7 = pnand %p6074_p3, %p6068_p8 }
  0x8e   : > { %4584 = vmatmul.mubr.f32.gmra.mrb[8].mxu0 %v6499_v32  ;;  %4429 = vmatprep.mubr.f32.mxu1 %v6490_v23  ;;  %7672 = vst [vmem:[#allocation26_spill] sm:$0xff] %v6580_v62 }
  0x8f   : > { %4586 = vmatprep.mubr.f32.mxu0 %v6504_v40  ;;  %5135 = vmatpush3.bf16.msra.mxu1 %v5132_v28  ;;  %v328_v28 = vmul.f32 %v6378_v33, %v290_v17  ;;  %v1351_v19 = vsel %vm1333_vm2, %v1318_v16, %v1302_v13  ;;  %v6659_v60 = vsel %vm1333_vm2, %v1302_v13, %v1318_v16  ;;  %v2070_v16 = vld [vmem:[#allocation5 + $0x330] sm:$0xff] }
  0x90   : > { %5231 = vmatpush3.bf16.msra.mxu0 %v5228_v29  ;;  %5137 = vmatprep.subr.bf16.mxu1 %v5136_v51  ;;  %v2064_v29 = vld [vmem:[#allocation5 + $0x300] sm:$0xff]  ;;  %v5252_v13 = vpack.c.bf16 %v2069_v57, %v2068_v55  ;;  %v1322_v55 = vrot.slane %v6499_v32, 7  ;;  %v1411_v57 = vld [vmem:[#allocation5 + $0x1b0] sm:$0xff] }
  0x91   : > { %4430 = vmatmul.mubr.f32.gmra.mrb[10].mxu1 %v6499_v32  ;;  %5233 = vmatprep.subr.bf16.mxu0 %v5232_v52  ;;  %v6554_v47 = vpack.c.bf16 %v2065_v30, %v2064_v29  ;;  %v6559_v48 = vadd.f32 %v6383_v34, %v328_v28  ;;  %v6644_v28 = vsel %vm1333_vm2, %v1301_v11, %v1317_v12 }
  0x92   : > { %4587 = vmatmul.mubr.f32.gmra.mrb[10].mxu0 %v6513_v56  ;;  %4432 = vmatprep.mubr.f32.mxu1 %v6504_v40 }
  0x93   : > { %4589 = vmatprep.mubr.f32.mxu0 %v6518_v61  ;;  %5139 = vmatpush3.bf16.msra.mxu1 %v5136_v51  ;;  %v330_v51 = vmul.f32 %v6378_v33, %v292_v37  ;;  %v7634_v33 = vrot.slane %v6448_v49, 7  ;;  %v1320_v37 = vrot.slane %v6471_v3, 7 }
  0x94   : > { %5235 = vmatpush3.bf16.msra.mxu0 %v5232_v52  ;;  %5141 = vmatprep.subr.bf16.mxu1 %v5140_v2  ;;  %v6564_v52 = vadd.f32 %v6383_v34, %v329_v36  ;;  %v1304_v36 = vrot.slane %v6462_v58, 7 }
  0x95   : > { %4433 = vmatmul.mubr.f32.gmra.mrb[12].mxu1 %v6513_v56  ;;  %5237 = vmatprep.subr.bf16.mxu0 %v5236_v4  ;;  %v6575_v59 = vadd.f32 %v6383_v34, %v330_v51  ;;  %v1407_v51 = vld [vmem:[#allocation5 + $0x190] sm:$0xff] }
  0x96   : > { %4590 = vmatmul.mubr.f32.gmra.mrb[12].mxu0 %v6527_v10  ;;  %4435 = vmatprep.mubr.f32.mxu1 %v6518_v61 }
  0x97   : > { %4592 = vmatprep.mubr.f32.mxu0 %v6532_v14  ;;  %5143 = vmatpush3.bf16.msra.mxu1 %v5140_v2  ;;  %v6591_v2 = vadd.f32 %v6383_v34, %v333_v63  ;;  %v6605_v34 = vsel %vm1366_vm1, 1.0, %v6173_v6  ;;  %v1350_v6 = vsel %vm1333_vm2, %v1317_v12, %v1301_v11  ;;  %v5184_v11 = vpack.c.bf16 %v1408_v53, %v1407_v51 }
  0x98   : > { %5239 = vmatpush3.bf16.msra.mxu0 %v5236_v4  ;;  %5145 = vmatprep.subr.bf16.mxu1 %v5144_v20  ;;  %v7635_v4 = vrot.slane %v6451_v50, 7  ;;  %v6632_v17 = vmul.f32 %v6605_v34, %v1350_v6  ;;  %v6647_v29 = vmul.f32 %v6605_v34, %v1351_v19  ;;  %v1305_v12 = vrot.slane %v6476_v9, 7  ;;  %v1409_v19 = vld [vmem:[#allocation5 + $0x1a0] sm:$0xff] }
  0x99   : > { %4436 = vmatmul.mubr.f32.gmra.mrb[14].mxu1 %v6527_v10  ;;  %5241 = vmatprep.subr.bf16.mxu0 %v5240_v21  ;;  %v1321_v6 = vrot.slane %v6485_v18, 7  ;;  %v5188_v53 = vpack.c.bf16 %v1410_v24, %v1409_v19 }
  0x9a   : > { %4593 = vmatmul.mubr.f32.gmra.mrb[14].mxu0 %v6541_v27  ;;  %4438 = vmatprep.mubr.f32.mxu1 %v6532_v14  ;;  %v1365_v5 = vsel %vm1333_vm2, %v7635_v4, %v7634_v33  ;;  %v1412_v33 = vld [vmem:[#allocation5 + $0x1b8] sm:$0xff] }
  0x9b   : > { %4595 = vmatprep.mubr.f32.mxu0 %v6546_v31  ;;  %5147 = vmatpush3.bf16.msra.mxu1 %v5144_v20  ;;  %v6615_v8 = vmul.f32 %v6605_v34, %v1365_v5  ;;  %v1303_v20 = vrot.slane %v6429_v35, 7  ;;  %v1353_v5 = vsel %vm1333_vm2, %v1320_v37, %v1304_v36  ;;  %v1354_v51 = vsel %vm1333_vm2, %v1321_v6, %v1305_v12 }
  0x9c   : > { %5243 = vmatpush3.bf16.msra.mxu0 %v5240_v21  ;;  %5181 = vmatprep.subr.bf16.mxu1 %v6551_v41  ;;  %v1319_v21 = vrot.slane %v6456_v54, 7  ;;  %v6694_v19 = vmul.f32 %v6605_v34, %v1354_v51  ;;  %v5192_v4 = vpack.c.bf16 %v1412_v33, %v1411_v57  ;;  %v2075_v51 = vld [vmem:[#allocation5 + $0x358] sm:$0xff] }
  0x9d   : > { %4439 = vmatmul.mubr.f32.gmra.mrb[16].mxu1 %v6541_v27  ;;  %5245 = vmatprep.subr.bf16.mxu0 %v6554_v47 }
  0x9e   : > { %4596 = vmatmul.mubr.f32.gmra.mrb[16].mxu0 %v6559_v48  ;;  %4441 = vmatprep.mubr.f32.mxu1 %v6546_v31  ;;  %v1352_v30 = vsel %vm1333_vm2, %v1319_v21, %v1303_v20  ;;  %v6676_v25 = vsel %vm1333_vm2, %v1303_v20, %v1319_v21  ;;  %v2072_v21 = vld [vmem:[#allocation5 + $0x340] sm:$0xff] }
  0x9f   : > { %4598 = vmatprep.mubr.f32.mxu0 %v6564_v52  ;;  %v6662_v63 = vmul.f32 %v6605_v34, %v1352_v30  ;;  %v6679_v30 = vmul.f32 %v6605_v34, %v1353_v5  ;;  %v2073_v5 = vld [vmem:[#allocation5 + $0x348] sm:$0xff] }
  0xa1   : > { %4442 = vmatmul.mubr.f32.gmra.mrb[18].mxu1 %v6559_v48 }
  0xa2   : > { %4599 = vmatmul.mubr.f32.gmra.mrb[18].mxu0 %v6575_v59  ;;  %4444 = vmatprep.mubr.f32.mxu1 %v6564_v52 }
  0xa3   : > { %4601 = vmatprep.mubr.f32.mxu0 %v6580_v62 }
  0xa5   : > { %4445 = vmatmul.mubr.f32.gmra.mrb[20].mxu1 %v6575_v59 }
  0xa6   : > { %4602 = vmatmul.mubr.f32.gmra.mrb[20].mxu0 %v6587_v0  ;;  %4447 = vmatprep.mubr.f32.mxu1 %v6580_v62 }
  0xa7   : > { %4604 = vmatprep.mubr.f32.mxu0 %v6591_v2 }
  0xa9   : > { %4448 = vmatmul.mubr.f32.gmra.mrb[22].mxu1 %v6587_v0 }
  0xaa   : > { %4605 = vmatmul.mubr.f32.gmra.mrb[22].mxu0 %v6416_v22  ;;  %4450 = vmatprep.mubr.f32.mxu1 %v6591_v2 }
  0xab   : > { %4607 = vmatprep.mubr.f32.mxu0 %v6432_v38 }
  0xad   : > { %4451 = vmatmul.mubr.f32.gmra.mrb[24].mxu1 %v6416_v22 }
  0xae   : > { %4608 = vmatmul.mubr.f32.gmra.mrb[24].mxu0 %v6438_v42  ;;  %4453 = vmatprep.mubr.f32.mxu1 %v6432_v38 }
  0xaf   : > { %4610 = vmatprep.mubr.f32.mxu0 %v6441_v45 }
  0xb1   : > { %4454 = vmatmul.mubr.f32.gmra.mrb[26].mxu1 %v6438_v42 }
  0xb2   : > { %4611 = vmatmul.mubr.f32.gmra.mrb[26].mxu0 %v6444_v46  ;;  %4456 = vmatprep.mubr.f32.mxu1 %v6441_v45 }
  0xb3   : > { %4613 = vmatprep.mubr.f32.mxu0 %v6448_v49 }
  0xb5   : > { %4457 = vmatmul.mubr.f32.gmra.mrb[28].mxu1 %v6444_v46 }
  0xb6   : > { %4614 = vmatmul.mubr.f32.gmra.mrb[28].mxu0 %v6451_v50  ;;  %4459 = vmatprep.mubr.f32.mxu1 %v6448_v49 }
  0xb7   : > { %4728 = vmatprep.mubr.f32.mxu0 %v6632_v17 }
  0xb9   : > { %4460 = vmatmul.mubr.f32.gmra.mrb[30].mxu1 %v6451_v50 }
  0xba   : > { %4729 = vmatmul.mubr.f32.vlgmr.msra.gmra.mrb[30].mxu0 %v6644_v28  ;;  %4494 = vmatprep.mubr.f32.mxu1 %v6390_v43 }
  0xbb   : > { %4731 = vmatprep.mubr.f32.mxu0 %v6647_v29  ;;  %5247 = vmatpush3.bf16.msra.mxu0 %v6554_v47  ;;  %v2071_v47 = vld [vmem:[#allocation5 + $0x338] sm:$0xff] }
  0xbc   : > { %5249 = vmatprep.subr.bf16.mxu0 %v5248_v39  ;;  %v5256_v20 = vpack.c.bf16 %v2071_v47, %v2070_v16  ;;  %v1307_v16 = vrot.slane %v6504_v40, 7  ;;  %v1323_v47 = vrot.slane %v6513_v56, 7 }
  0xbd   : > { %4495 = vmatmul.mubr.f32.vlgmr.msra.gmra.mrb[2].mxu1 %v6409_v15 }
  0xbe   : > { %4732 = vmatmul.mubr.f32.gmra.mrb[32].mxu0 %v6659_v60  ;;  %5183 = vmatpush3.bf16.msra.mxu1 %v6551_v41  ;;  %v1306_v41 = vrot.slane %v6490_v23, 7  ;;  %v1356_v57 = vsel %vm1333_vm2, %v1323_v47, %v1307_v16 }
  0xbf   : > { %4497 = vmatprep.mubr.f32.mxu1 %v6393_v44  ;;  %4734 = vmatprep.mubr.f32.mxu0 %v6662_v63 }
  0xc0   : > { %5185 = vmatprep.subr.bf16.mxu1 %v5184_v11  ;;  %5251 = vmatpush3.bf16.msra.mxu0 %v5248_v39  ;;  %v6691_v39 = vsel %vm1333_vm2, %v1304_v36, %v1320_v37  ;;  %v1355_v24 = vsel %vm1333_vm2, %v1322_v55, %v1306_v41  ;;  %v1414_v36 = vld [vmem:[#allocation5 + $0x1c8] sm:$0xff]  ;;  %v5260_v37 = vpack.c.bf16 %v2073_v5, %v2072_v21  ;;  %v1308_v21 = vrot.slane %v6518_v61, 7 }
  0xc1   : > { %4498 = vmatmul.mubr.f32.gmra.mrb[4].mxu1 %v6422_v26  ;;  %5253 = vmatprep.subr.bf16.mxu0 %v5252_v13  ;;  %v6709_v33 = vmul.f32 %v6605_v34, %v1355_v24  ;;  %v1324_v5 = vrot.slane %v6527_v10, 7  ;;  %v2077_v24 = vld [vmem:[#allocation5 + $0x368] sm:$0xff]  ;;  %v6721_v7 = vsel %vm1333_vm2, %v1306_v41, %v1322_v55 }
  0xc2   : > { %4735 = vmatmul.mubr.f32.gmra.mrb[34].mxu0 %v6676_v25  ;;  %4500 = vmatprep.mubr.f32.mxu1 %v6429_v35  ;;  %v1413_v35 = vld [vmem:[#allocation5 + $0x1c0] sm:$0xff]  ;;  %v1418_v41 = vld [vmem:[#allocation5 + $0x1e8] sm:$0xff] }
  0xc3   : > { %4737 = vmatprep.mubr.f32.mxu0 %v6679_v30  ;;  %5187 = vmatpush3.bf16.msra.mxu1 %v5184_v11  ;;  %v2074_v11 = vld [vmem:[#allocation5 + $0x350] sm:$0xff] }
  0xc4   : > { %5189 = vmatprep.subr.bf16.mxu1 %v5188_v53  ;;  %5255 = vmatpush3.bf16.msra.mxu0 %v5252_v13  ;;  %v6706_v13 = vsel %vm1333_vm2, %v1305_v12, %v1321_v6  ;;  %v1416_v12 = vld [vmem:[#allocation5 + $0x1d8] sm:$0xff]  ;;  %v5264_v6 = vpack.c.bf16 %v2075_v51, %v2074_v11  ;;  %v1325_v11 = vrot.slane %v6541_v27, 7 }
  0xc5   : > { %4501 = vmatmul.mubr.f32.gmra.mrb[6].mxu1 %v6456_v54  ;;  %5257 = vmatprep.subr.bf16.mxu0 %v5256_v20  ;;  %v1415_v54 = vld [vmem:[#allocation5 + $0x1d0] sm:$0xff] }
  0xc6   : > { %4738 = vmatmul.mubr.f32.gmra.mrb[36].mxu0 %v6691_v39  ;;  %4503 = vmatprep.mubr.f32.mxu1 %v6462_v58  ;;  %v5196_v58 = vpack.c.bf16 %v1414_v36, %v1413_v35  ;;  %v6724_v35 = vmul.f32 %v6605_v34, %v1356_v57  ;;  %v1309_v36 = vrot.slane %v6532_v14, 7  ;;  %v5200_v51 = vpack.c.bf16 %v1416_v12, %v1415_v54  ;;  %v2079_v57 = vld [vmem:[#allocation5 + $0x378] sm:$0xff] }
  0xc7   : > { %4740 = vmatprep.mubr.f32.mxu0 %v6694_v19  ;;  %5191 = vmatpush3.bf16.msra.mxu1 %v5188_v53  ;;  %v2076_v53 = vld [vmem:[#allocation5 + $0x360] sm:$0xff]  ;;  %v1310_v12 = vrot.slane %v6546_v31, 7 }
  0xc8   : > { %5193 = vmatprep.subr.bf16.mxu1 %v5192_v4  ;;  %5259 = vmatpush3.bf16.msra.mxu0 %v5256_v20  ;;  %v1357_v20 = vsel %vm1333_vm2, %v1324_v5, %v1308_v21  ;;  %v5268_v55 = vpack.c.bf16 %v2077_v24, %v2076_v53  ;;  %v1326_v53 = vrot.slane %v6559_v48, 7 }
  0xc9   : > { %4504 = vmatmul.mubr.f32.gmra.mrb[8].mxu1 %v6471_v3  ;;  %5261 = vmatprep.subr.bf16.mxu0 %v5260_v37  ;;  %v6736_v3 = vsel %vm1333_vm2, %v1307_v16, %v1323_v47  ;;  %v6739_v54 = vmul.f32 %v6605_v34, %v1357_v20  ;;  %v1419_v16 = vld [vmem:[#allocation5 + $0x1f0] sm:$0xff]  ;;  %v1420_v47 = vld [vmem:[#allocation5 + $0x1f8] sm:$0xff]  ;;  %v2828_v20 = vld [vmem:[#allocation5 + $0x108] sm:$0xff] }
  0xca   : > { %4741 = vmatmul.mubr.f32.gmra.mrb[38].mxu0 %v6706_v13  ;;  %4506 = vmatprep.mubr.f32.mxu1 %v6476_v9  ;;  %v1417_v9 = vld [vmem:[#allocation5 + $0x1e0] sm:$0xff] }
  0xcb   : > { %4743 = vmatprep.mubr.f32.mxu0 %v6709_v33  ;;  %5195 = vmatpush3.bf16.msra.mxu1 %v5192_v4  ;;  %v2078_v4 = vld [vmem:[#allocation5 + $0x370] sm:$0xff]  ;;  %v5204_v24 = vpack.c.bf16 %v1418_v41, %v1417_v9  ;;  %v1311_v41 = vrot.slane %v6564_v52, 7 }
  0xcc   : > { %5197 = vmatprep.subr.bf16.mxu1 %v5196_v58  ;;  %5263 = vmatpush3.bf16.msra.mxu0 %v5260_v37  ;;  %v1358_v37 = vsel %vm1333_vm2, %v1325_v11, %v1309_v36 }
  0xcd   : > { %4507 = vmatmul.mubr.f32.gmra.mrb[10].mxu1 %v6485_v18  ;;  %5265 = vmatprep.subr.bf16.mxu0 %v5264_v6  ;;  %v6751_v18 = vsel %vm1333_vm2, %v1308_v21, %v1324_v5  ;;  %v6754_v9 = vmul.f32 %v6605_v34, %v1358_v37  ;;  %v2490_v21 = vld [vmem:[#allocation5 + $0x288] sm:$0xff] }
  0xce   : > { %4744 = vmatmul.mubr.f32.gmra.mrb[40].mxu0 %v6721_v7  ;;  %4509 = vmatprep.mubr.f32.mxu1 %v6490_v23  ;;  %v5272_v23 = vpack.c.bf16 %v2079_v57, %v2078_v4  ;;  %v1327_v4 = vrot.slane %v6575_v59, 7  ;;  %v5208_v57 = vpack.c.bf16 %v1420_v47, %v1419_v16  ;;  %v1312_v16 = vrot.slane %v6580_v62, 7 }
  0xcf   : > { %4746 = vmatprep.mubr.f32.mxu0 %v6724_v35  ;;  %5199 = vmatpush3.bf16.msra.mxu1 %v5196_v58  ;;  %v2827_v58 = vld [vmem:[#allocation5 + $0x100] sm:$0xff]  ;;  %v1328_v47 = vrot.slane %v6587_v0, 7 }
  0xd0   : > { %5201 = vmatprep.subr.bf16.mxu1 %v5200_v51  ;;  %5267 = vmatpush3.bf16.msra.mxu0 %v5264_v6  ;;  %v1359_v6 = vsel %vm1333_vm2, %v1326_v53, %v1310_v12  ;;  %v6761_v5 = vpack.c.bf16 %v2828_v20, %v2827_v58  ;;  %v1360_v37 = vsel %vm1333_vm2, %v1327_v4, %v1311_v41 }
  0xd1   : > { %4510 = vmatmul.mubr.f32.gmra.mrb[12].mxu1 %v6499_v32  ;;  %5269 = vmatprep.subr.bf16.mxu0 %v5268_v55 }
  0xd2   : > { %4747 = vmatmul.mubr.f32.gmra.mrb[42].mxu0 %v6736_v3  ;;  %4512 = vmatprep.mubr.f32.mxu1 %v6504_v40  ;;  %v2489_v40 = vld [vmem:[#allocation5 + $0x280] sm:$0xff] }
  0xd3   : > { %4749 = vmatprep.mubr.f32.mxu0 %v6739_v54  ;;  %5203 = vmatpush3.bf16.msra.mxu1 %v5200_v51  ;;  %v6768_v51 = vsel %vm1333_vm2, %v1309_v36, %v1325_v11  ;;  %v6777_v58 = vpack.c.bf16 %v2490_v21, %v2489_v40  ;;  %v6786_v36 = vsel %vm1333_vm2, %v1310_v12, %v1326_v53  ;;  %v1313_v40 = vrot.slane %v6591_v2, 7 }
  0xd4   : > { %5205 = vmatprep.subr.bf16.mxu1 %v5204_v24  ;;  %5271 = vmatpush3.bf16.msra.mxu0 %v5268_v55  ;;  %v6771_v55 = vmul.f32 %v6605_v34, %v1359_v6  ;;  %v6789_v11 = vmul.f32 %v6605_v34, %v1360_v37  ;;  %v6802_v12 = vsel %vm1333_vm2, %v1311_v41, %v1327_v4  ;;  %v1314_v6 = vrot.slane %v6432_v38, 7 }
  0xd5   : > { %4513 = vmatmul.mubr.f32.gmra.mrb[14].mxu1 %v6513_v56  ;;  %5273 = vmatprep.subr.bf16.mxu0 %v5272_v23  ;;  %v6817_v41 = vsel %vm1333_vm2, %v1312_v16, %v1328_v47  ;;  %v1315_v37 = vrot.slane %v6441_v45, 7 }
  0xd6   : > { %4750 = vmatmul.mubr.f32.gmra.mrb[44].mxu0 %v6751_v18  ;;  %4515 = vmatprep.mubr.f32.mxu1 %v6518_v61 }
  0xd7   : > { %4752 = vmatprep.mubr.f32.mxu0 %v6754_v9  ;;  %5207 = vmatpush3.bf16.msra.mxu1 %v5204_v24  ;;  %v1329_v24 = vrot.slane %v6416_v22, 7 }
  0xd8   : > { %5209 = vmatprep.subr.bf16.mxu1 %v5208_v57  ;;  %5275 = vmatpush3.bf16.msra.mxu0 %v5272_v23  ;;  %v1361_v23 = vsel %vm1333_vm2, %v1328_v47, %v1312_v16 }
  0xd9   : > { %4516 = vmatmul.mubr.f32.gmra.mrb[16].mxu1 %v6527_v10  ;;  %5309 = vmatprep.subr.bf16.mxu0 %v6761_v5  ;;  %v6805_v53 = vmul.f32 %v6605_v34, %v1361_v23  ;;  %v1362_v20 = vsel %vm1333_vm2, %v1329_v24, %v1313_v40  ;;  %v1331_v23 = vrot.slane %v6444_v46, 7  ;;  %v6832_v16 = vsel %vm1333_vm2, %v1313_v40, %v1329_v24 }
  0xda   : > { %4753 = vmatmul.mubr.f32.gmra.mrb[46].mxu0 %v6768_v51  ;;  %4518 = vmatprep.mubr.f32.mxu1 %v6532_v14  ;;  %v6820_v4 = vmul.f32 %v6605_v34, %v1362_v20 }
  0xdb   : > { %4755 = vmatprep.mubr.f32.mxu0 %v6771_v55  ;;  %5211 = vmatpush3.bf16.msra.mxu1 %v5208_v57  ;;  %v1330_v57 = vrot.slane %v6438_v42, 7  ;;  %v1364_v20 = vsel %vm1333_vm2, %v1331_v23, %v1315_v37  ;;  %v6856_v24 = vsel %vm1333_vm2, %v1315_v37, %v1331_v23  ;;  %v2831_v37 = vld [vmem:[#allocation5 + $0x120] sm:$0xff]  ;;  %v2832_v23 = vld [vmem:[#allocation5 + $0x128] sm:$0xff] }
  0xdc   : > { %5277 = vmatprep.subr.bf16.mxu1 %v6777_v58  ;;  %v6848_v40 = vmul.f32 %v6605_v34, %v1364_v20  ;;  %v2492_v20 = vld [vmem:[#allocation5 + $0x298] sm:$0xff] }
  0xdd   : > { %4519 = vmatmul.mubr.f32.gmra.mrb[18].mxu1 %v6541_v27  ;;  %v1363_v21 = vsel %vm1333_vm2, %v1330_v57, %v1314_v6 }
  0xde   : > { %4756 = vmatmul.mubr.f32.gmra.mrb[48].mxu0 %v6786_v36  ;;  %4521 = vmatprep.mubr.f32.mxu1 %v6546_v31  ;;  %v6835_v47 = vmul.f32 %v6605_v34, %v1363_v21  ;;  %v2829_v21 = vld [vmem:[#allocation5 + $0x110] sm:$0xff] }
  0xdf   : > { %4758 = vmatprep.mubr.f32.mxu0 %v6789_v11 }
  0xe1   : > { %4522 = vmatmul.mubr.f32.gmra.mrb[20].mxu1 %v6559_v48 }
  0xe2   : > { %4759 = vmatmul.mubr.f32.gmra.mrb[50].mxu0 %v6802_v12  ;;  %4524 = vmatprep.mubr.f32.mxu1 %v6564_v52 }
  0xe3   : > { %4761 = vmatprep.mubr.f32.mxu0 %v6805_v53 }
  0xe5   : > { %4525 = vmatmul.mubr.f32.gmra.mrb[22].mxu1 %v6575_v59 }
  0xe6   : > { %4762 = vmatmul.mubr.f32.gmra.mrb[52].mxu0 %v6817_v41  ;;  %4527 = vmatprep.mubr.f32.mxu1 %v6580_v62  ;;  %v6845_v62 = vsel %vm1333_vm2, %v1314_v6, %v1330_v57  ;;  %v2830_v6 = vld [vmem:[#allocation5 + $0x118] sm:$0xff]  ;;  %v2491_v57 = vld [vmem:[#allocation5 + $0x290] sm:$0xff] }
  0xe7   : > { %4764 = vmatprep.mubr.f32.mxu0 %v6820_v4  ;;  %v6862_v34 = vpack.c.bf16 %v2830_v6, %v2829_v21  ;;  %v2493_v21 = vld [vmem:[#allocation5 + $0x2a0] sm:$0xff]  ;;  %v2494_v6 = vld [vmem:[#allocation5 + $0x2a8] sm:$0xff] }
  0xe9   : > { %4528 = vmatmul.mubr.f32.gmra.mrb[24].mxu1 %v6587_v0 }
  0xea   : > { %4765 = vmatmul.mubr.f32.gmra.mrb[54].mxu0 %v6832_v16  ;;  %4530 = vmatprep.mubr.f32.mxu1 %v6591_v2 }
  0xeb   : > { %4767 = vmatprep.mubr.f32.mxu0 %v6835_v47 }
  0xed   : > { %4531 = vmatmul.mubr.f32.gmra.mrb[26].mxu1 %v6416_v22 }
  0xee   : > { %4768 = vmatmul.mubr.f32.gmra.mrb[56].mxu0 %v6845_v62  ;;  %4533 = vmatprep.mubr.f32.mxu1 %v6432_v38 }
  0xef   : > { %4770 = vmatprep.mubr.f32.mxu0 %v6848_v40 }
  0xf1   : > { %4534 = vmatmul.mubr.f32.gmra.mrb[28].mxu1 %v6438_v42  ;;  %v5280_v42 = vpack.c.bf16 %v2492_v20, %v2491_v57  ;;  %v5284_v57 = vpack.c.bf16 %v2494_v6, %v2493_v21  ;;  %v2496_v20 = vld [vmem:[#allocation5 + $0x2b8] sm:$0xff] }
  0xf2   : > { %4771 = vmatmul.mubr.f32.gmra.mrb[58].mxu0 %v6856_v24  ;;  %4536 = vmatprep.mubr.f32.mxu1 %v6441_v45  ;;  %v2834_v45 = vld [vmem:[#allocation5 + $0x138] sm:$0xff] }
  0xf3   : > { %4805 = vmatprep.mubr.f32.mxu0 %v6647_v29  ;;  %v2838_v6 = vld [vmem:[#allocation5 + $0x158] sm:$0xff] }
  0xf5   : > { %4537 = vmatmul.mubr.f32.gmra.mrb[30].mxu1 %v6444_v46  ;;  %v6871_v46 = vpack.c.bf16 %v2832_v23, %v2831_v37 }
  0xf6   : > { %4806 = vmatmul.mubr.f32.vlgmr.msra.gmra.mrb[60].mxu0 %v6659_v60  ;;  %4648 = vmatprep.mubr.f32.mxu1 %v6632_v17  ;;  %v2833_v17 = vld [vmem:[#allocation5 + $0x130] sm:$0xff] }
  0xf7   : > { %4808 = vmatprep.mubr.f32.mxu0 %v6662_v63  ;;  %5311 = vmatpush3.bf16.msra.mxu0 %v6761_v5  ;;  %v6880_v37 = vpack.c.bf16 %v2834_v45, %v2833_v17  ;;  %v2498_v45 = vld [vmem:[#allocation5 + $0x2c8] sm:$0xff]  ;;  %v2500_v17 = vld [vmem:[#allocation5 + $0x2d8] sm:$0xff] }
  0xf8   : > { %5313 = vmatprep.subr.bf16.mxu0 %v6862_v34 }
  0xf9   : > { %4649 = vmatmul.mubr.f32.vlgmr.msra.gmra.mrb[32].mxu1 %v6644_v28  ;;  %v2495_v28 = vld [vmem:[#allocation5 + $0x2b0] sm:$0xff] }
  0xfa   : > { %4809 = vmatmul.mubr.f32.gmra.mrb[30].mxu0 %v6676_v25  ;;  %5279 = vmatpush3.bf16.msra.mxu1 %v6777_v58  ;;  %v2835_v58 = vld [vmem:[#allocation5 + $0x140] sm:$0xff]  ;;  %v5288_v23 = vpack.c.bf16 %v2496_v20, %v2495_v28  ;;  %v2840_v20 = vld [vmem:[#allocation5 + $0x168] sm:$0xff] }
  0xfb   : > { %4651 = vmatprep.mubr.f32.mxu1 %v6647_v29  ;;  %4811 = vmatprep.mubr.f32.mxu0 %v6679_v30  ;;  %v2836_v29 = vld [vmem:[#allocation5 + $0x148] sm:$0xff] }
  0xfc   : > { %5281 = vmatprep.subr.bf16.mxu1 %v5280_v42  ;;  %5315 = vmatpush3.bf16.msra.mxu0 %v6862_v34  ;;  %v6888_v21 = vpack.c.bf16 %v2836_v29, %v2835_v58  ;;  %v2501_v58 = vld [vmem:[#allocation5 + $0x2e0] sm:$0xff]  ;;  %v2502_v29 = vld [vmem:[#allocation5 + $0x2e8] sm:$0xff] }
  0xfd   : > { %4652 = vmatmul.mubr.f32.gmra.mrb[34].mxu1 %v6659_v60  ;;  %5317 = vmatprep.subr.bf16.mxu0 %v6871_v46  ;;  %v2497_v60 = vld [vmem:[#allocation5 + $0x2c0] sm:$0xff] }
  0xfe   : > { %4812 = vmatmul.mubr.f32.gmra.mrb[32].mxu0 %v6691_v39  ;;  %4654 = vmatprep.mubr.f32.mxu1 %v6662_v63  ;;  %v2837_v63 = vld [vmem:[#allocation5 + $0x150] sm:$0xff] }
  0xff   : > { %4814 = vmatprep.mubr.f32.mxu0 %v6694_v19  ;;  %5283 = vmatpush3.bf16.msra.mxu1 %v5280_v42  ;;  %v5292_v42 = vpack.c.bf16 %v2498_v45, %v2497_v60  ;;  %v6896_v28 = vpack.c.bf16 %v2838_v6, %v2837_v63  ;;  %v2842_v60 = vld [vmem:[#allocation5 + $0x178] sm:$0xff]  ;;  %v2503_v45 = vld [vmem:[#allocation5 + $0x2f0] sm:$0xff]  ;;  %v3150_v6 = vld [vmem:[#allocation5 + $0x408] sm:$0xff] }
 0x100   : > { %5285 = vmatprep.subr.bf16.mxu1 %v5284_v57  ;;  %5319 = vmatpush3.bf16.msra.mxu0 %v6871_v46  ;;  %v2504_v63 = vld [vmem:[#allocation5 + $0x2f8] sm:$0xff] }
 0x101   : > { %4655 = vmatmul.mubr.f32.gmra.mrb[36].mxu1 %v6676_v25  ;;  %5321 = vmatprep.subr.bf16.mxu0 %v6880_v37  ;;  %v2499_v25 = vld [vmem:[#allocation5 + $0x2d0] sm:$0xff] }
 0x102   : > { %4815 = vmatmul.mubr.f32.gmra.mrb[34].mxu0 %v6706_v13  ;;  %4657 = vmatprep.mubr.f32.mxu1 %v6679_v30  ;;  %v2839_v30 = vld [vmem:[#allocation5 + $0x160] sm:$0xff] }
 0x103   : > { %4817 = vmatprep.mubr.f32.mxu0 %v6709_v33  ;;  %5287 = vmatpush3.bf16.msra.mxu1 %v5284_v57  ;;  %v5296_v57 = vpack.c.bf16 %v2500_v17, %v2499_v25  ;;  %v3153_v25 = vld [vmem:[#allocation5 + $0x420] sm:$0xff]  ;;  %v3154_v17 = vld [vmem:[#allocation5 + $0x428] sm:$0xff] }
 0x104   : > { %5289 = vmatprep.subr.bf16.mxu1 %v5288_v23  ;;  %5323 = vmatpush3.bf16.msra.mxu0 %v6880_v37 }
 0x105   : > { %4658 = vmatmul.mubr.f32.gmra.mrb[38].mxu1 %v6691_v39  ;;  %5325 = vmatprep.subr.bf16.mxu0 %v6888_v21  ;;  %v6904_v39 = vpack.c.bf16 %v2840_v20, %v2839_v30  ;;  %v7678_v20 = vld [vmem:[#allocation20_spill] sm:$0xff] }
 0x106   : > { %4818 = vmatmul.mubr.f32.gmra.mrb[36].mxu0 %v6721_v7  ;;  %4660 = vmatprep.mubr.f32.mxu1 %v6694_v19  ;;  %v2841_v19 = vld [vmem:[#allocation5 + $0x170] sm:$0xff] }
 0x107   : > { %4820 = vmatprep.mubr.f32.mxu0 %v6724_v35  ;;  %5291 = vmatpush3.bf16.msra.mxu1 %v5288_v23  ;;  %v5300_v23 = vpack.c.bf16 %v2502_v29, %v2501_v58  ;;  %v7679_v58 = vld [vmem:[#allocation21_spill] sm:$0xff] }
 0x108   : > { %5293 = vmatprep.subr.bf16.mxu1 %v5292_v42  ;;  %5327 = vmatpush3.bf16.msra.mxu0 %v6888_v21  ;;  %v2404_v29 = vrot.slane %v7679_v58, 1 }
 0x109   : > { %4661 = vmatmul.mubr.f32.gmra.mrb[40].mxu1 %v6706_v13  ;;  %5329 = vmatprep.subr.bf16.mxu0 %v6896_v28  ;;  %v6912_v13 = vpack.c.bf16 %v2842_v60, %v2841_v19  ;;  %v5348_v19 = vpack.c.bf16 %v3154_v17, %v3153_v25  ;;  %v3155_v60 = vld [vmem:[#allocation5 + $0x430] sm:$0xff]  ;;  %v2392_v17 = vrot.slane %v6518_v61, 1 }
 0x10a   : > { %4821 = vmatmul.mubr.f32.gmra.mrb[38].mxu0 %v6736_v3  ;;  %4663 = vmatprep.mubr.f32.mxu1 %v6709_v33  ;;  %v3149_v33 = vld [vmem:[#allocation5 + $0x400] sm:$0xff]  ;;  %v3163_v61 = vld [vmem:[#allocation5 + $0x470] sm:$0xff] }
 0x10b   : > { %4823 = vmatprep.mubr.f32.mxu0 %v6739_v54  ;;  %5295 = vmatpush3.bf16.msra.mxu1 %v5292_v42  ;;  %v5304_v42 = vpack.c.bf16 %v2504_v63, %v2503_v45  ;;  %v7680_v63 = vld [vmem:[#allocation22_spill] sm:$0xff] }
 0x10c   : > { %5297 = vmatprep.subr.bf16.mxu1 %v5296_v57  ;;  %5331 = vmatpush3.bf16.msra.mxu0 %v6896_v28 }
 0x10d   : > { %4664 = vmatmul.mubr.f32.gmra.mrb[42].mxu1 %v6721_v7  ;;  %5333 = vmatprep.subr.bf16.mxu0 %v6904_v39  ;;  %v5340_v7 = vpack.c.bf16 %v3150_v6, %v3149_v33  ;;  %v2389_v33 = vrot.slane %v7680_v63, 1  ;;  %v7681_v6 = vld [vmem:[#allocation23_spill] sm:$0xff] }
 0x10e   : > { %4824 = vmatmul.mubr.f32.gmra.mrb[40].mxu0 %v6751_v18  ;;  %4666 = vmatprep.mubr.f32.mxu1 %v6724_v35  ;;  %v7673_v35 = vrot.slane %v6451_v50, 7 }
 0x10f   : > { %4826 = vmatprep.mubr.f32.mxu0 %v6754_v9  ;;  %5299 = vmatpush3.bf16.msra.mxu1 %v5296_v57  ;;  %v2388_v57 = vrot.slane %v7678_v20, 1 }
 0x110   : > { %5301 = vmatprep.subr.bf16.mxu1 %v5300_v23  ;;  %5335 = vmatpush3.bf16.msra.mxu0 %v6904_v39 }
 0x111   : > { %4667 = vmatmul.mubr.f32.gmra.mrb[44].mxu1 %v6736_v3  ;;  %5337 = vmatprep.subr.bf16.mxu0 %v6912_v13  ;;  %v2385_v3 = vrot.slane %v6390_v43, 1  ;;  %v2437_v45 = vsel %vm2417_vm3, %v2404_v29, %v2388_v57 }
 0x112   : > { %4827 = vmatmul.mubr.f32.gmra.mrb[42].mxu0 %v6768_v51  ;;  %4669 = vmatprep.mubr.f32.mxu1 %v6739_v54  ;;  %v7674_v54 = vrot.slane %v6448_v49, 7 }
 0x113   : > { %4829 = vmatprep.mubr.f32.mxu0 %v6771_v55  ;;  %5303 = vmatpush3.bf16.msra.mxu1 %v5300_v23  ;;  %v3156_v23 = vld [vmem:[#allocation5 + $0x438] sm:$0xff] }
 0x114   : > { %5339 = vmatpush3.bf16.msra.mxu0 %v6912_v13  ;;  %5305 = vmatprep.subr.bf16.mxu1 %v5304_v42 }
 0x115   : > { %4670 = vmatmul.mubr.f32.gmra.mrb[46].mxu1 %v6751_v18  ;;  %5341 = vmatprep.subr.bf16.mxu0 %v5340_v7  ;;  %v2401_v18 = vrot.slane %v6409_v15, 1  ;;  %v2386_v15 = vrot.slane %v6393_v44, 1 }
 0x116   : > { %4830 = vmatmul.mubr.f32.gmra.mrb[44].mxu0 %v6786_v36  ;;  %4672 = vmatprep.mubr.f32.mxu1 %v6754_v9  ;;  %v1349_v9 = vsel %vm1333_vm2, %v7674_v54, %v7673_v35  ;;  %v3157_v35 = vld [vmem:[#allocation5 + $0x440] sm:$0xff]  ;;  %v3158_v54 = vld [vmem:[#allocation5 + $0x448] sm:$0xff] }
 0x117   : > { %4832 = vmatprep.mubr.f32.mxu0 %v6789_v11  ;;  %5307 = vmatpush3.bf16.msra.mxu1 %v5304_v42  ;;  %v2434_v43 = vsel %vm2417_vm3, %v2401_v18, %v2385_v3  ;;  %v2405_v42 = vrot.slane %v7681_v6, 1 }
 0x118   : > { %5372 = vmatprep.subr.bf16.mxu1 %v6761_v5 }
 0x119   : > { %4673 = vmatmul.mubr.f32.gmra.mrb[48].mxu1 %v6768_v51  ;;  %v2402_v51 = vrot.slane %v6422_v26, 1 }
 0x11a   : > { %4833 = vmatmul.mubr.f32.gmra.mrb[46].mxu0 %v6802_v12  ;;  %4675 = vmatprep.mubr.f32.mxu1 %v6771_v55  ;;  %v2418_v55 = vsel %vm2417_vm3, %v2385_v3, %v2401_v18  ;;  %v5352_v3 = vpack.c.bf16 %v3156_v23, %v3155_v60 }
 0x11b   : > { %4835 = vmatprep.mubr.f32.mxu0 %v6805_v53 }
 0x11d   : > { %4676 = vmatmul.mubr.f32.gmra.mrb[50].mxu1 %v6786_v36  ;;  %v3151_v36 = vld [vmem:[#allocation5 + $0x410] sm:$0xff] }
 0x11e   : > { %4836 = vmatmul.mubr.f32.gmra.mrb[48].mxu0 %v6817_v41  ;;  %4678 = vmatprep.mubr.f32.mxu1 %v6789_v11  ;;  %v3152_v11 = vld [vmem:[#allocation5 + $0x418] sm:$0xff] }
 0x11f   : > { %4838 = vmatprep.mubr.f32.mxu0 %v6820_v4 }
 0x121   : > { %4679 = vmatmul.mubr.f32.gmra.mrb[52].mxu1 %v6802_v12  ;;  %v7675_v12 = vld [vmem:[#allocation14_spill] sm:$0xff] }
 0x122   : > { %4839 = vmatmul.mubr.f32.gmra.mrb[50].mxu0 %v6832_v16  ;;  %4681 = vmatprep.mubr.f32.mxu1 %v6805_v53  ;;  %v2457_v53 = vmul.f32 %v7675_v12, %v2434_v43  ;;  %v7005_v18 = vmul.f32 %v7675_v12, %v2437_v45  ;;  %v7682_v43 = vld [vmem:[#allocation24_spill] sm:$0xff] }
 0x123   : > { %4841 = vmatprep.mubr.f32.mxu0 %v6835_v47 }
 0x125   : > { %4682 = vmatmul.mubr.f32.gmra.mrb[54].mxu1 %v6817_v41  ;;  %v2435_v41 = vsel %vm2417_vm3, %v2402_v51, %v2386_v15 }
 0x126   : > { %4842 = vmatmul.mubr.f32.gmra.mrb[52].mxu0 %v6845_v62  ;;  %4684 = vmatprep.mubr.f32.mxu1 %v6820_v4  ;;  %v7676_v4 = vld [vmem:[#allocation15_spill] sm:$0xff] }
 0x127   : > { %4844 = vmatprep.mubr.f32.mxu0 %v6848_v40  ;;  %v2387_v44 = vrot.slane %v7676_v4, 1 }
 0x129   : > { %4685 = vmatmul.mubr.f32.gmra.mrb[56].mxu1 %v6832_v16  ;;  %v7677_v16 = vld [vmem:[#allocation19_spill] sm:$0xff] }
 0x12a   : > { %4845 = vmatmul.mubr.f32.gmra.mrb[54].mxu0 %v6856_v24  ;;  %4687 = vmatprep.mubr.f32.mxu1 %v6835_v47  ;;  %v2403_v26 = vrot.slane %v7677_v16, 1  ;;  %v6973_v47 = vsel %vm2417_vm3, %v2386_v15, %v2402_v51  ;;  %v2390_v15 = vrot.slane %v7682_v43, 1  ;;  %v2406_v51 = vrot.slane %v6499_v32, 1  ;;  %v3160_v32 = vld [vmem:[#allocation5 + $0x458] sm:$0xff] }
 0x12b   : > { %4847 = vmatprep.mubr.f32.mxu0 %v6615_v8 }
 0x12c   : > { %v2436_v30 = vsel %vm2417_vm3, %v2403_v26, %v2387_v44  ;;  %v7032_v16 = vsel %vm2417_vm3, %v2390_v15, %v2406_v51 }
 0x12d   : > { %4688 = vmatmul.mubr.f32.gmra.mrb[58].mxu1 %v6845_v62  ;;  %v5344_v62 = vpack.c.bf16 %v3152_v11, %v3151_v36  ;;  %v3159_v11 = vld [vmem:[#allocation5 + $0x450] sm:$0xff] }
 0x12e   : > { %4848 = vmatmul.mubr.f32.gmra.mrb[56].mxu0 %v1349_v9  ;;  %4690 = vmatprep.mubr.f32.mxu1 %v6848_v40  ;;  %v6978_v40 = vmul.f32 %v7675_v12, %v2435_v41  ;;  %v7683_v41 = vld [vmem:[#allocation25_spill] sm:$0xff] }
 0x12f   : > { %4962 = vmatprep.mubr.f32.mxu0 %v2418_v55  ;;  %v2391_v4 = vrot.slane %v7683_v41, 1 }
 0x131   : > { %4691 = vmatmul.mubr.f32.gmra.mrb[60].mxu1 %v6856_v24  ;;  %v6987_v24 = vsel %vm2417_vm3, %v2387_v44, %v2403_v26  ;;  %v2407_v44 = vrot.slane %v6513_v56, 1  ;;  %v5360_v26 = vpack.c.bf16 %v3160_v32, %v3159_v11  ;;  %v3162_v56 = vld [vmem:[#allocation5 + $0x468] sm:$0xff]  ;;  %v2413_v32 = vrot.slane %v6416_v22, 1 }
 0x132   : > { %4963 = vmatmul.mubr.f32.vlgmr.msra.gmra.mrb[62].mxu0 %v2457_v53  ;;  %4693 = vmatprep.mubr.f32.mxu1 %v6615_v8  ;;  %v6991_v8 = vmul.f32 %v7675_v12, %v2436_v30  ;;  %v2408_v30 = vrot.slane %v6527_v10, 1  ;;  %v3164_v10 = vld [vmem:[#allocation5 + $0x478] sm:$0xff] }
 0x133   : > { %4965 = vmatprep.mubr.f32.mxu0 %v6973_v47  ;;  %5343 = vmatpush3.bf16.msra.mxu0 %v5340_v7  ;;  %v7000_v7 = vsel %vm2417_vm3, %v2388_v57, %v2404_v29  ;;  %v2440_v25 = vsel %vm2417_vm3, %v2407_v44, %v2391_v4  ;;  %v7049_v20 = vsel %vm2417_vm3, %v2391_v4, %v2407_v44  ;;  %v2393_v29 = vrot.slane %v6532_v14, 1  ;;  %v7685_v4 = vld [vmem:[#allocation16_spill] sm:$0xff] }
 0x134   : > { %5345 = vmatprep.subr.bf16.mxu0 %v5344_v62  ;;  %v2441_v58 = vsel %vm2417_vm3, %v2408_v30, %v2392_v17  ;;  %v7066_v60 = vsel %vm2417_vm3, %v2392_v17, %v2408_v30  ;;  %v5368_v23 = vpack.c.bf16 %v3164_v10, %v3163_v61  ;;  %v2414_v44 = vrot.slane %v7685_v4, 1 }
 0x135   : > { %4694 = vmatmul.mubr.f32.gmra.mrb[30].mxu1 %v1349_v9  ;;  %v2438_v9 = vsel %vm2417_vm3, %v2405_v42, %v2389_v33  ;;  %v7073_v14 = vmul.f32 %v7675_v12, %v2441_v58 }
 0x136   : > { %4966 = vmatmul.mubr.f32.gmra.mrb[64].mxu0 %v6978_v40  ;;  %4882 = vmatprep.mubr.f32.mxu1 %v2418_v55  ;;  %v5356_v55 = vpack.c.bf16 %v3158_v54, %v3157_v35  ;;  %v7022_v36 = vmul.f32 %v7675_v12, %v2438_v9  ;;  %v2410_v35 = vrot.slane %v6559_v48, 1  ;;  %v2395_v48 = vrot.slane %v6564_v52, 1 }
 0x137   : > { %4968 = vmatprep.mubr.f32.mxu0 %v6987_v24  ;;  %5347 = vmatpush3.bf16.msra.mxu0 %v5344_v62  ;;  %v3161_v62 = vld [vmem:[#allocation5 + $0x460] sm:$0xff] }
 0x138   : > { %5349 = vmatprep.subr.bf16.mxu0 %v5348_v19  ;;  %v5364_v57 = vpack.c.bf16 %v3162_v56, %v3161_v62 }
 0x139   : > { %4883 = vmatmul.mubr.f32.vlgmr.msra.gmra.mrb[62].mxu1 %v2457_v53  ;;  %v2439_v53 = vsel %vm2417_vm3, %v2406_v51, %v2390_v15 }
 0x13a   : > { %4969 = vmatmul.mubr.f32.gmra.mrb[66].mxu0 %v6991_v8  ;;  %5380 = vmatpush3.bf16.msra.mxu1 %v6761_v5  ;;  %v7015_v5 = vsel %vm2417_vm3, %v2389_v33, %v2405_v42 }
 0x13b   : > { %4885 = vmatprep.mubr.f32.mxu1 %v6973_v47  ;;  %4971 = vmatprep.mubr.f32.mxu0 %v7000_v7 }
 0x13c   : > { %5351 = vmatpush3.bf16.msra.mxu0 %v5348_v19  ;;  %5373 = vmatprep.subr.bf16.mxu1 %v6862_v34  ;;  %v2409_v19 = vrot.slane %v6541_v27, 1 }
 0x13d   : > { %4886 = vmatmul.mubr.f32.gmra.mrb[64].mxu1 %v6978_v40  ;;  %5353 = vmatprep.subr.bf16.mxu0 %v5352_v3 }
 0x13e   : > { %4972 = vmatmul.mubr.f32.gmra.mrb[68].mxu0 %v7005_v18  ;;  %4888 = vmatprep.mubr.f32.mxu1 %v6987_v24  ;;  %v2442_v27 = vsel %vm2417_vm3, %v2409_v19, %v2393_v29 }
 0x13f   : > { %4974 = vmatprep.mubr.f32.mxu0 %v7015_v5  ;;  %5381 = vmatpush3.bf16.msra.mxu1 %v6862_v34  ;;  %v7039_v34 = vmul.f32 %v7675_v12, %v2439_v53  ;;  %v7088_v45 = vmul.f32 %v7675_v12, %v2442_v27 }
 0x140   : > { %5355 = vmatpush3.bf16.msra.mxu0 %v5352_v3  ;;  %5374 = vmatprep.subr.bf16.mxu1 %v6871_v46  ;;  %v2394_v3 = vrot.slane %v6546_v31, 1 }
 0x141   : > { %4889 = vmatmul.mubr.f32.gmra.mrb[66].mxu1 %v6991_v8  ;;  %5357 = vmatprep.subr.bf16.mxu0 %v5356_v55 }
 0x142   : > { %4975 = vmatmul.mubr.f32.gmra.mrb[70].mxu0 %v7022_v36  ;;  %4891 = vmatprep.mubr.f32.mxu1 %v7000_v7  ;;  %v2443_v31 = vsel %vm2417_vm3, %v2410_v35, %v2394_v3 }
 0x143   : > { %4977 = vmatprep.mubr.f32.mxu0 %v7032_v16  ;;  %5382 = vmatpush3.bf16.msra.mxu1 %v6871_v46  ;;  %v7056_v46 = vmul.f32 %v7675_v12, %v2440_v25  ;;  %v7686_v25 = vld [vmem:[#allocation17_spill] sm:$0xff] }
 0x144   : > { %5359 = vmatpush3.bf16.msra.mxu0 %v5356_v55  ;;  %5375 = vmatprep.subr.bf16.mxu1 %v6880_v37  ;;  %v2399_v17 = vrot.slane %v7686_v25, 1 }
 0x145   : > { %4892 = vmatmul.mubr.f32.gmra.mrb[68].mxu1 %v7005_v18  ;;  %5361 = vmatprep.subr.bf16.mxu0 %v5360_v26 }
 0x146   : > { %4978 = vmatmul.mubr.f32.gmra.mrb[72].mxu0 %v7039_v34  ;;  %4894 = vmatprep.mubr.f32.mxu1 %v7015_v5 }
 0x147   : > { %4980 = vmatprep.mubr.f32.mxu0 %v7049_v20  ;;  %5383 = vmatpush3.bf16.msra.mxu1 %v6880_v37  ;;  %v7081_v37 = vsel %vm2417_vm3, %v2393_v29, %v2409_v19  ;;  %v2400_v29 = vrot.slane %v6448_v49, 1 }
 0x148   : > { %5363 = vmatpush3.bf16.msra.mxu0 %v5360_v26  ;;  %5376 = vmatprep.subr.bf16.mxu1 %v6888_v21 }
 0x149   : > { %4895 = vmatmul.mubr.f32.gmra.mrb[70].mxu1 %v7022_v36  ;;  %5365 = vmatprep.subr.bf16.mxu0 %v5364_v57 }
 0x14a   : > { %4981 = vmatmul.mubr.f32.gmra.mrb[74].mxu0 %v7056_v46  ;;  %4897 = vmatprep.mubr.f32.mxu1 %v7032_v16 }
 0x14b   : > { %4983 = vmatprep.mubr.f32.mxu0 %v7066_v60  ;;  %5384 = vmatpush3.bf16.msra.mxu1 %v6888_v21 }
 0x14c   : > { %5367 = vmatpush3.bf16.msra.mxu0 %v5364_v57  ;;  %5377 = vmatprep.subr.bf16.mxu1 %v6896_v28 }
 0x14d   : > { %4898 = vmatmul.mubr.f32.gmra.mrb[72].mxu1 %v7039_v34  ;;  %5369 = vmatprep.subr.bf16.mxu0 %v5368_v23 }
 0x14e   : > { %4984 = vmatmul.mubr.f32.gmra.mrb[76].mxu0 %v7073_v14  ;;  %4900 = vmatprep.mubr.f32.mxu1 %v7049_v20 }
 0x14f   : > { %4986 = vmatprep.mubr.f32.mxu0 %v7081_v37  ;;  %5385 = vmatpush3.bf16.msra.mxu1 %v6896_v28 }
 0x150   : > { %v4416_v21 = vpop.f32.mrb[0].mxu1  ;;  %5371 = vmatpush3.bf16.msra.mxu0 %v5368_v23  ;;  %5378 = vmatprep.subr.bf16.mxu1 %v6904_v39 }
 0x151   : > { %v465_v63 = vpop.f32.mrb[1].mxu1  ;;  %4901 = vmatmul.mubr.f32.gmra.mrb[74].mxu1 %v7056_v46  ;;  %v4573_v33 = vpop.f32.mrb[0].mxu0 }
 0x152   : > { %4987 = vmatmul.mubr.f32.gmra.mrb[78].mxu0 %v7088_v45  ;;  %4903 = vmatprep.mubr.f32.mxu1 %v7066_v60  ;;  %v7096_v6 = vadd.f32 %v4573_v33, %v4416_v21  ;;  %v1062_v42 = vpop.f32.mrb[1].mxu0 }
 0x153   : > { %5039 = vmatprep.mubr.f32.mxu0 %v6973_v47  ;;  %v7101_v28 = vadd.f32 %v1062_v42, %v465_v63  ;;  %5386 = vmatpush3.bf16.msra.mxu1 %v6904_v39  ;;  %v2411_v47 = vrot.slane %v6575_v59, 1  ;;  %v7119_v39 = vsel %vm2417_vm3, %v2394_v3, %v2410_v35 }
 0x154   : > { %5379 = vmatprep.subr.bf16.mxu1 %v6912_v13 }
 0x155   : > { %4904 = vmatmul.mubr.f32.gmra.mrb[76].mxu1 %v7073_v14  ;;  %v7106_v54 = vpop.f32.mrb[2].mxu0  ;;  %v2444_v59 = vsel %vm2417_vm3, %v2411_v47, %v2395_v48  ;;  %v7139_v51 = vsel %vm2417_vm3, %v2395_v48, %v2411_v47 }
 0x156   : > { %5040 = vmatmul.mubr.f32.vlgmr.msra.gmra.mrb[80].mxu0 %v6978_v40  ;;  %4906 = vmatprep.mubr.f32.mxu1 %v7081_v37  ;;  %v7110_v9 = vpop.f32.mrb[3].mxu0  ;;  %v7124_v40 = vmul.f32 %v7675_v12, %v2443_v31 }
 0x157   : > { %5042 = vmatprep.mubr.f32.mxu0 %v6987_v24  ;;  %5387 = vmatpush3.bf16.msra.mxu1 %v6912_v13  ;;  %v7684_v24 = vld [vmem:[#allocation26_spill] sm:$0xff]  ;;  %v2412_v13 = vrot.slane %v6587_v0, 1 }
 0x158   : > { %v2396_v15 = vrot.slane %v7684_v24, 1 }
 0x159   : > { %4907 = vmatmul.mubr.f32.gmra.mrb[78].mxu1 %v7088_v45  ;;  %v7126_v43 = vpop.f32.mrb[4].mxu0 }
 0x15a   : > { %5043 = vmatmul.mubr.f32.gmra.mrb[62].mxu0 %v6991_v8  ;;  %4909 = vmatprep.mubr.f32.mxu1 %v7119_v39  ;;  %v7130_v52 = vpop.f32.mrb[5].mxu0  ;;  %v7143_v8 = vmul.f32 %v7675_v12, %v2444_v59  ;;  %v2445_v0 = vsel %vm2417_vm3, %v2412_v13, %v2396_v15  ;;  %v7158_v53 = vsel %vm2417_vm3, %v2396_v15, %v2412_v13 }
 0x15b   : > { %5045 = vmatprep.mubr.f32.mxu0 %v7000_v7  ;;  %v2397_v7 = vrot.slane %v6591_v2, 1 }
 0x15d   : > { %4910 = vmatmul.mubr.f32.gmra.mrb[80].mxu1 %v7124_v40  ;;  %v7145_v55 = vpop.f32.mrb[6].mxu0  ;;  %v2446_v22 = vsel %vm2417_vm3, %v2413_v32, %v2397_v7  ;;  %v2430_v26 = vsel %vm2417_vm3, %v2397_v7, %v2413_v32 }
 0x15e   : > { %5046 = vmatmul.mubr.f32.gmra.mrb[64].mxu0 %v7005_v18  ;;  %4912 = vmatprep.mubr.f32.mxu1 %v7139_v51  ;;  %v7149_v11 = vpop.f32.mrb[7].mxu0  ;;  %v7162_v18 = vmul.f32 %v7675_v12, %v2445_v0 }
 0x15f   : > { %5048 = vmatprep.mubr.f32.mxu0 %v7015_v5  ;;  %v2398_v5 = vrot.slane %v6432_v38, 1 }
 0x161   : > { %4913 = vmatmul.mubr.f32.gmra.mrb[82].mxu1 %v7143_v8  ;;  %v7164_v41 = vpop.f32.mrb[8].mxu0  ;;  %v2447_v38 = vsel %vm2417_vm3, %v2414_v44, %v2398_v5  ;;  %v2431_v57 = vsel %vm2417_vm3, %v2398_v5, %v2414_v44 }
 0x162   : > { %5049 = vmatmul.mubr.f32.gmra.mrb[66].mxu0 %v7022_v36  ;;  %4915 = vmatprep.mubr.f32.mxu1 %v7158_v53  ;;  %v7168_v2 = vpop.f32.mrb[9].mxu0  ;;  %v2481_v36 = vmul.f32 %v7675_v12, %v2446_v22  ;;  %v2483_v61 = vmul.f32 %v7675_v12, %v2447_v38 }
 0x163   : > { %5051 = vmatprep.mubr.f32.mxu0 %v7032_v16  ;;  %v7687_v16 = vld [vmem:[#allocation18_spill] sm:$0xff] }
 0x164   : > { %v2415_v30 = vrot.slane %v7687_v16, 1 }
 0x165   : > { %4916 = vmatmul.mubr.f32.gmra.mrb[84].mxu1 %v7162_v18  ;;  %v7179_v62 = vpop.f32.mrb[10].mxu0 }
 0x166   : > { %5052 = vmatmul.mubr.f32.gmra.mrb[68].mxu0 %v7039_v34  ;;  %4918 = vmatprep.mubr.f32.mxu1 %v2430_v26  ;;  %v7182_v56 = vpop.f32.mrb[11].mxu0  ;;  %v2448_v58 = vsel %vm2417_vm3, %v2415_v30, %v2399_v17  ;;  %v2432_v19 = vsel %vm2417_vm3, %v2399_v17, %v2415_v30 }
 0x167   : > { %5054 = vmatprep.mubr.f32.mxu0 %v7049_v20  ;;  %v2416_v20 = vrot.slane %v6451_v50, 1  ;;  %v2485_v23 = vmul.f32 %v7675_v12, %v2448_v58 }
 0x169   : > { %4919 = vmatmul.mubr.f32.gmra.mrb[86].mxu1 %v2481_v36  ;;  %v7192_v10 = vpop.f32.mrb[12].mxu0  ;;  %v2449_v49 = vsel %vm2417_vm3, %v2416_v20, %v2400_v29  ;;  %v2433_v50 = vsel %vm2417_vm3, %v2400_v29, %v2416_v20 }
 0x16a   : > { %5055 = vmatmul.mubr.f32.gmra.mrb[70].mxu0 %v7056_v46  ;;  %4921 = vmatprep.mubr.f32.mxu1 %v2431_v57  ;;  %v7195_v34 = vpop.f32.mrb[13].mxu0 }
 0x16b   : > { %5057 = vmatprep.mubr.f32.mxu0 %v7066_v60  ;;  %v2487_v60 = vmul.f32 %v7675_v12, %v2449_v49 }
 0x16d   : > { %4922 = vmatmul.mubr.f32.gmra.mrb[88].mxu1 %v2483_v61  ;;  %v7205_v27 = vpop.f32.mrb[14].mxu0 }
 0x16e   : > { %5058 = vmatmul.mubr.f32.gmra.mrb[72].mxu0 %v7073_v14  ;;  %4924 = vmatprep.mubr.f32.mxu1 %v2432_v19  ;;  %v7208_v46 = vpop.f32.mrb[15].mxu0 }
 0x16f   : > { %5060 = vmatprep.mubr.f32.mxu0 %v7081_v37 }
 0x171   : > { %4925 = vmatmul.mubr.f32.gmra.mrb[90].mxu1 %v2485_v23  ;;  %v7216_v21 = vpop.f32.mrb[16].mxu0 }
 0x172   : > { %5061 = vmatmul.mubr.f32.gmra.mrb[74].mxu0 %v7088_v45  ;;  %4927 = vmatprep.mubr.f32.mxu1 %v2433_v50  ;;  %v7219_v14 = vpop.f32.mrb[17].mxu0 }
 0x173   : > { %5063 = vmatprep.mubr.f32.mxu0 %v7119_v39 }
 0x175   : > { %4928 = vmatmul.mubr.f32.gmra.mrb[92].mxu1 %v2487_v60  ;;  %v7222_v63 = vpop.f32.mrb[18].mxu0 }
 0x176   : > { %5064 = vmatmul.mubr.f32.gmra.mrb[76].mxu0 %v7124_v40  ;;  %4989 = vmatprep.mubr.f32.mxu1 %v7119_v39  ;;  %v7226_v1 = vpop.f32.mrb[19].mxu0 }
 0x177   : > { %5066 = vmatprep.mubr.f32.mxu0 %v7139_v51 }
 0x179   : > { %4990 = vmatmul.mubr.f32.vlgmr.msra.gmra.mrb[82].mxu1 %v7124_v40  ;;  %v7230_v12 = vpop.f32.mrb[20].mxu0 }
 0x17a   : > { %5067 = vmatmul.mubr.f32.gmra.mrb[78].mxu0 %v7143_v8  ;;  %4992 = vmatprep.mubr.f32.mxu1 %v7139_v51  ;;  %v7234_v37 = vpop.f32.mrb[21].mxu0 }
 0x17b   : > { %5069 = vmatprep.mubr.f32.mxu0 %v7158_v53 }
 0x17d   : > { %4993 = vmatmul.mubr.f32.gmra.mrb[84].mxu1 %v7143_v8  ;;  %v7238_v45 = vpop.f32.mrb[22].mxu0 }
 0x17e   : > { %4995 = vmatprep.mubr.f32.mxu1 %v7158_v53  ;;  %v7241_v33 = vpop.f32.mrb[23].mxu0  ;;  %5070 = vmatmul.mubr.f32.gmra.mrb[82].mxu0 %v7162_v18 }
 0x17f   : > { %5072 = vmatprep.mubr.f32.mxu0 %v2430_v26 }
 0x181   : > { %4996 = vmatmul.mubr.f32.gmra.mrb[86].mxu1 %v7162_v18  ;;  %v7245_v42 = vpop.f32.mrb[24].mxu0 }
 0x182   : > { %4998 = vmatprep.mubr.f32.mxu1 %v2430_v26  ;;  %v7247_v3 = vpop.f32.mrb[25].mxu0  ;;  %5073 = vmatmul.mubr.f32.gmra.mrb[84].mxu0 %v2481_v36 }
 0x183   : > { %5075 = vmatprep.mubr.f32.mxu0 %v2431_v57 }
 0x185   : > { %4999 = vmatmul.mubr.f32.gmra.mrb[88].mxu1 %v2481_v36  ;;  %v4612_v35 = vpop.f32.mrb[26].mxu0 }
 0x186   : > { %5001 = vmatprep.mubr.f32.mxu1 %v2431_v57  ;;  %v1192_v31 = vpop.f32.mrb[27].mxu0  ;;  %5076 = vmatmul.mubr.f32.gmra.mrb[86].mxu0 %v2483_v61 }
 0x187   : > { %5078 = vmatprep.mubr.f32.mxu0 %v2432_v19 }
 0x189   : > { %5002 = vmatmul.mubr.f32.gmra.mrb[90].mxu1 %v2483_v61  ;;  %v4615_v48 = vpop.f32.mrb[28].mxu0 }
 0x18a   : > { %5004 = vmatprep.mubr.f32.mxu1 %v2432_v19  ;;  %v1202_v47 = vpop.f32.mrb[29].mxu0  ;;  %5079 = vmatmul.mubr.f32.gmra.mrb[88].mxu0 %v2485_v23 }
 0x18b   : > { %5081 = vmatprep.mubr.f32.mxu0 %v2433_v50 }
 0x18d   : > { %5005 = vmatmul.mubr.f32.gmra.mrb[92].mxu1 %v2485_v23 }
 0x18e   : > { %5082 = vmatmul.mubr.f32.gmra.mrb[90].mxu0 %v2487_v60 }
 0x190   : > { %v4496_v39 = vpop.f32.mrb[2].mxu1 }
 0x191   : > { %v7250_v40 = vadd.f32 %v7106_v54, %v4496_v39  ;;  %v739_v59 = vpop.f32.mrb[3].mxu1 }
 0x192   : > { %v7253_v24 = vadd.f32 %v7110_v9, %v739_v59 }
 0x194   : > { %v4499_v15 = vpop.f32.mrb[4].mxu1 }
 0x195   : > { %v7256_v13 = vadd.f32 %v7126_v43, %v4499_v15  ;;  %v749_v51 = vpop.f32.mrb[5].mxu1 }
 0x196   : > { %v7259_v8 = vadd.f32 %v7130_v52, %v749_v51 }
 0x198   : > { %v4502_v0 = vpop.f32.mrb[6].mxu1 }
 0x199   : > { %v7262_v7 = vadd.f32 %v7145_v55, %v4502_v0  ;;  %v759_v32 = vpop.f32.mrb[7].mxu1 }
 0x19a   : > { %v7265_v54 = vadd.f32 %v7149_v11, %v759_v32 }
 0x19c   : > { %v4505_v53 = vpop.f32.mrb[8].mxu1 }
 0x19d   : > { %v7268_v9 = vadd.f32 %v7164_v41, %v4505_v53  ;;  %v769_v18 = vpop.f32.mrb[9].mxu1 }
 0x19e   : > { %v7271_v43 = vadd.f32 %v7168_v2, %v769_v18 }
 0x1a0   : > { %v4508_v22 = vpop.f32.mrb[10].mxu1 }
 0x1a1   : > { %v7274_v52 = vadd.f32 %v7179_v62, %v4508_v22  ;;  %v779_v5 = vpop.f32.mrb[11].mxu1 }
 0x1a2   : > { %v7277_v55 = vadd.f32 %v7182_v56, %v779_v5 }
 0x1a4   : > { %v4511_v4 = vpop.f32.mrb[12].mxu1 }
 0x1a5   : > { %v7280_v11 = vadd.f32 %v7192_v10, %v4511_v4  ;;  %v789_v44 = vpop.f32.mrb[13].mxu1 }
 0x1a6   : > { %v7283_v41 = vadd.f32 %v7195_v34, %v789_v44 }
 0x1a8   : > { %v4514_v26 = vpop.f32.mrb[14].mxu1 }
 0x1a9   : > { %v7286_v2 = vadd.f32 %v7205_v27, %v4514_v26  ;;  %v799_v36 = vpop.f32.mrb[15].mxu1 }
 0x1aa   : > { %v7289_v62 = vadd.f32 %v7208_v46, %v799_v36 }
 0x1ac   : > { %v4517_v38 = vpop.f32.mrb[16].mxu1 }
 0x1ad   : > { %v7292_v56 = vadd.f32 %v7216_v21, %v4517_v38  ;;  %v809_v25 = vpop.f32.mrb[17].mxu1 }
 0x1ae   : > { %v7295_v17 = vadd.f32 %v7219_v14, %v809_v25 }
 0x1b0   : > { %v4520_v16 = vpop.f32.mrb[18].mxu1 }
 0x1b1   : > { %v7298_v30 = vadd.f32 %v7222_v63, %v4520_v16  ;;  %v819_v57 = vpop.f32.mrb[19].mxu1 }
 0x1b2   : > { %v7301_v61 = vadd.f32 %v7226_v1, %v819_v57 }
 0x1b4   : > { %v4523_v10 = vpop.f32.mrb[20].mxu1 }
 0x1b5   : > { %v7304_v34 = vadd.f32 %v7230_v12, %v4523_v10  ;;  %v829_v58 = vpop.f32.mrb[21].mxu1 }
 0x1b6   : > { %v7307_v29 = vadd.f32 %v7234_v37, %v829_v58 }
 0x1b8   : > { %v4526_v20 = vpop.f32.mrb[22].mxu1 }
 0x1b9   : > { %v7310_v19 = vadd.f32 %v7238_v45, %v4526_v20  ;;  %v839_v23 = vpop.f32.mrb[23].mxu1 }
 0x1ba   : > { %v7313_v27 = vadd.f32 %v7241_v33, %v839_v23 }
 0x1bc   : > { %v4529_v46 = vpop.f32.mrb[24].mxu1 }
 0x1bd   : > { %v7316_v49 = vadd.f32 %v7245_v42, %v4529_v46  ;;  %v849_v50 = vpop.f32.mrb[25].mxu1 }
 0x1be   : > { %v7319_v60 = vadd.f32 %v7247_v3, %v849_v50 }
 0x1c0   : > { %v4532_v21 = vpop.f32.mrb[26].mxu1 }
 0x1c1   : > { %v7321_v14 = vadd.f32 %v4612_v35, %v4532_v21  ;;  %v859_v63 = vpop.f32.mrb[27].mxu1 }
 0x1c2   : > { %v7323_v1 = vadd.f32 %v1192_v31, %v859_v63 }
 0x1c4   : > { %v4535_v12 = vpop.f32.mrb[28].mxu1 }
 0x1c5   : > { %v7325_v37 = vadd.f32 %v4615_v48, %v4535_v12  ;;  %v869_v45 = vpop.f32.mrb[29].mxu1  ;;  %v7327_v33 = vpop.f32.mrb[58].mxu0 }
 0x1c6   : > { %v7329_v39 = vadd.f32 %v1202_v47, %v869_v45  ;;  %v7331_v42 = vpop.f32.mrb[59].mxu0 }
 0x1c9   : > { %v4807_v59 = vpop.f32.mrb[60].mxu0 }
 0x1ca   : > { %v2146_v15 = vpop.f32.mrb[61].mxu0 }
 0x1cc   : > { %v4650_v3 = vpop.f32.mrb[32].mxu1 }
 0x1cd   : > { %v5393_v51 = vadd.f32 %v7096_v6, %v4650_v3  ;;  %v4810_v35 = vpop.f32.mrb[30].mxu0  ;;  %v1487_v0 = vpop.f32.mrb[33].mxu1 }
 0x1ce   : > { %v5408_v31 = vadd.f32 %v7101_v28, %v1487_v0  ;;  %v2156_v32 = vpop.f32.mrb[31].mxu0 }
 0x1cf   : > { %v7335_v53 = vadd.f32 %v5393_v51, %v4807_v59 }
 0x1d0   : > { %v4653_v48 = vpop.f32.mrb[34].mxu1  ;;  %v7337_v18 = vadd.f32 %v5408_v31, %v2146_v15 }
 0x1d1   : > { %v5423_v47 = vadd.f32 %v7250_v40, %v4653_v48  ;;  %v4813_v22 = vpop.f32.mrb[32].mxu0  ;;  %v1497_v5 = vpop.f32.mrb[35].mxu1 }
 0x1d2   : > { %v5438_v4 = vadd.f32 %v7253_v24, %v1497_v5  ;;  %v2166_v44 = vpop.f32.mrb[33].mxu0 }
 0x1d3   : > { %v7341_v26 = vadd.f32 %v5423_v47, %v4810_v35 }
 0x1d4   : > { %v4656_v6 = vpop.f32.mrb[36].mxu1  ;;  %v7343_v36 = vadd.f32 %v5438_v4, %v2156_v32 }
 0x1d5   : > { %v5453_v28 = vadd.f32 %v7256_v13, %v4656_v6  ;;  %v4816_v38 = vpop.f32.mrb[34].mxu0  ;;  %v1507_v25 = vpop.f32.mrb[37].mxu1 }
 0x1d6   : > { %v5468_v16 = vadd.f32 %v7259_v8, %v1507_v25  ;;  %v2176_v57 = vpop.f32.mrb[35].mxu0 }
 0x1d7   : > { %v7347_v10 = vadd.f32 %v5453_v28, %v4813_v22 }
 0x1d8   : > { %v4659_v40 = vpop.f32.mrb[38].mxu1  ;;  %v7349_v58 = vadd.f32 %v5468_v16, %v2166_v44 }
 0x1d9   : > { %v5483_v24 = vadd.f32 %v7262_v7, %v4659_v40  ;;  %v4819_v20 = vpop.f32.mrb[36].mxu0  ;;  %v1517_v23 = vpop.f32.mrb[39].mxu1 }
 0x1da   : > { %v5498_v46 = vadd.f32 %v7265_v54, %v1517_v23  ;;  %v2186_v50 = vpop.f32.mrb[37].mxu0 }
 0x1db   : > { %v7353_v21 = vadd.f32 %v5483_v24, %v4816_v38 }
 0x1dc   : > { %v4662_v13 = vpop.f32.mrb[40].mxu1  ;;  %v7355_v63 = vadd.f32 %v5498_v46, %v2176_v57 }
 0x1dd   : > { %v5513_v8 = vadd.f32 %v7268_v9, %v4662_v13  ;;  %v4822_v12 = vpop.f32.mrb[38].mxu0  ;;  %v1527_v45 = vpop.f32.mrb[41].mxu1 }
 0x1de   : > { %v5528_v59 = vadd.f32 %v7271_v43, %v1527_v45  ;;  %v2196_v15 = vpop.f32.mrb[39].mxu0 }
 0x1df   : > { %v7359_v3 = vadd.f32 %v5513_v8, %v4819_v20 }
 0x1e0   : > { %v4665_v7 = vpop.f32.mrb[42].mxu1  ;;  %v7361_v51 = vadd.f32 %v5528_v59, %v2186_v50 }
 0x1e1   : > { %v5543_v54 = vadd.f32 %v7274_v52, %v4665_v7  ;;  %v4825_v35 = vpop.f32.mrb[40].mxu0  ;;  %v1537_v0 = vpop.f32.mrb[43].mxu1 }
 0x1e2   : > { %v5558_v31 = vadd.f32 %v7277_v55, %v1537_v0  ;;  %v2206_v32 = vpop.f32.mrb[41].mxu0 }
 0x1e3   : > { %v7365_v48 = vadd.f32 %v5543_v54, %v4822_v12 }
 0x1e4   : > { %v4668_v9 = vpop.f32.mrb[44].mxu1  ;;  %v7367_v47 = vadd.f32 %v5558_v31, %v2196_v15 }
 0x1e5   : > { %v5573_v43 = vadd.f32 %v7280_v11, %v4668_v9  ;;  %v4828_v22 = vpop.f32.mrb[42].mxu0  ;;  %v1547_v5 = vpop.f32.mrb[45].mxu1 }
 0x1e6   : > { %v5588_v4 = vadd.f32 %v7283_v41, %v1547_v5  ;;  %v2216_v44 = vpop.f32.mrb[43].mxu0 }
 0x1e7   : > { %v7371_v6 = vadd.f32 %v5573_v43, %v4825_v35 }
 0x1e8   : > { %v4671_v52 = vpop.f32.mrb[46].mxu1  ;;  %v7373_v28 = vadd.f32 %v5588_v4, %v2206_v32 }
 0x1e9   : > { %v5603_v55 = vadd.f32 %v7286_v2, %v4671_v52  ;;  %v4831_v38 = vpop.f32.mrb[44].mxu0  ;;  %v1557_v25 = vpop.f32.mrb[47].mxu1 }
 0x1ea   : > { %v5618_v16 = vadd.f32 %v7289_v62, %v1557_v25  ;;  %v2226_v57 = vpop.f32.mrb[45].mxu0 }
 0x1eb   : > { %v7377_v40 = vadd.f32 %v5603_v55, %v4828_v22 }
 0x1ec   : > { %v4674_v11 = vpop.f32.mrb[48].mxu1  ;;  %v7379_v24 = vadd.f32 %v5618_v16, %v2216_v44 }
 0x1ed   : > { %v5633_v41 = vadd.f32 %v7292_v56, %v4674_v11  ;;  %v4834_v20 = vpop.f32.mrb[46].mxu0  ;;  %v1567_v23 = vpop.f32.mrb[49].mxu1 }
 0x1ee   : > { %v5648_v46 = vadd.f32 %v7295_v17, %v1567_v23  ;;  %v2236_v50 = vpop.f32.mrb[47].mxu0 }
 0x1ef   : > { %v7383_v13 = vadd.f32 %v5633_v41, %v4831_v38 }
 0x1f0   : > { %v4677_v2 = vpop.f32.mrb[50].mxu1  ;;  %v7385_v8 = vadd.f32 %v5648_v46, %v2226_v57 }
 0x1f1   : > { %v5663_v62 = vadd.f32 %v7298_v30, %v4677_v2  ;;  %v4837_v12 = vpop.f32.mrb[48].mxu0  ;;  %v1577_v45 = vpop.f32.mrb[51].mxu1 }
 0x1f2   : > { %v5678_v59 = vadd.f32 %v7301_v61, %v1577_v45  ;;  %v2246_v15 = vpop.f32.mrb[49].mxu0 }
 0x1f3   : > { %v7389_v7 = vadd.f32 %v5663_v62, %v4834_v20 }
 0x1f4   : > { %v4680_v56 = vpop.f32.mrb[52].mxu1  ;;  %v7391_v54 = vadd.f32 %v5678_v59, %v2236_v50 }
 0x1f5   : > { %v5693_v17 = vadd.f32 %v7304_v34, %v4680_v56  ;;  %v4840_v35 = vpop.f32.mrb[50].mxu0  ;;  %v1587_v0 = vpop.f32.mrb[53].mxu1 }
 0x1f6   : > { %v5708_v31 = vadd.f32 %v7307_v29, %v1587_v0  ;;  %v2256_v32 = vpop.f32.mrb[51].mxu0 }
 0x1f7   : > { %v7395_v9 = vadd.f32 %v5693_v17, %v4837_v12 }
 0x1f8   : > { %v4683_v30 = vpop.f32.mrb[54].mxu1  ;;  %v7397_v43 = vadd.f32 %v5708_v31, %v2246_v15 }
 0x1f9   : > { %v5723_v61 = vadd.f32 %v7310_v19, %v4683_v30  ;;  %v4843_v22 = vpop.f32.mrb[52].mxu0  ;;  %v1597_v5 = vpop.f32.mrb[55].mxu1 }
 0x1fa   : > { %v5738_v4 = vadd.f32 %v7313_v27, %v1597_v5  ;;  %v2266_v44 = vpop.f32.mrb[53].mxu0 }
 0x1fb   : > { %v7401_v52 = vadd.f32 %v5723_v61, %v4840_v35 }
 0x1fc   : > { %v4686_v34 = vpop.f32.mrb[56].mxu1  ;;  %v7403_v55 = vadd.f32 %v5738_v4, %v2256_v32 }
 0x1fd   : > { %v5753_v29 = vadd.f32 %v7316_v49, %v4686_v34  ;;  %v4846_v38 = vpop.f32.mrb[54].mxu0  ;;  %v1607_v25 = vpop.f32.mrb[57].mxu1 }
 0x1fe   : > { %v5768_v16 = vadd.f32 %v7319_v60, %v1607_v25  ;;  %v2276_v57 = vpop.f32.mrb[55].mxu0 }
 0x1ff   : > { %v7407_v11 = vadd.f32 %v5753_v29, %v4843_v22 }
 0x200   : > { %v4689_v19 = vpop.f32.mrb[58].mxu1  ;;  %v7409_v41 = vadd.f32 %v5768_v16, %v2266_v44 }
 0x201   : > { %v5783_v27 = vadd.f32 %v7321_v14, %v4689_v19  ;;  %v4849_v20 = vpop.f32.mrb[56].mxu0  ;;  %v1617_v23 = vpop.f32.mrb[59].mxu1 }
 0x202   : > { %v5798_v46 = vadd.f32 %v7323_v1, %v1617_v23  ;;  %v2286_v50 = vpop.f32.mrb[57].mxu0 }
 0x203   : > { %v7413_v2 = vadd.f32 %v5783_v27, %v4846_v38 }
 0x204   : > { %v4692_v49 = vpop.f32.mrb[60].mxu1  ;;  %v7415_v62 = vadd.f32 %v5798_v46, %v2276_v57 }
 0x205   : > { %v5813_v60 = vadd.f32 %v7325_v37, %v4692_v49  ;;  %v1627_v12 = vpop.f32.mrb[61].mxu1 }
 0x206   : > { %v5828_v45 = vadd.f32 %v7329_v39, %v1627_v12 }
 0x207   : > { %v7419_v59 = vadd.f32 %v5813_v60, %v4849_v20 }
 0x208   : > { %v4695_v15 = vpop.f32.mrb[30].mxu1  ;;  %v7421_v56 = vadd.f32 %v5828_v45, %v2286_v50 }
 0x209   : > { %v7424_v14 = vadd.f32 %v7327_v33, %v4695_v15  ;;  %v1637_v1 = vpop.f32.mrb[31].mxu1 }
 0x20a   : > { %v7427_v17 = vadd.f32 %v7331_v42, %v1637_v1 }
 0x20c   : > { %v4884_v35 = vpop.f32.mrb[62].mxu1 }
 0x20d   : > { %v5399_v0 = vadd.f32 %v7335_v53, %v4884_v35  ;;  %v2571_v31 = vpop.f32.mrb[63].mxu1 }
 0x20e   : > { %v5414_v37 = vadd.f32 %v7337_v18, %v2571_v31 }
 0x210   : > { %v4887_v32 = vpop.f32.mrb[64].mxu1 }
 0x211   : > { %v5429_v39 = vadd.f32 %v7341_v26, %v4887_v32  ;;  %v2581_v30 = vpop.f32.mrb[65].mxu1 }
 0x212   : > { %v5444_v61 = vadd.f32 %v7343_v36, %v2581_v30 }
 0x214   : > { %v4890_v22 = vpop.f32.mrb[66].mxu1 }
 0x215   : > { %v5459_v33 = vadd.f32 %v7347_v10, %v4890_v22  ;;  %v2591_v5 = vpop.f32.mrb[67].mxu1 }
 0x216   : > { %v5474_v4 = vadd.f32 %v7349_v58, %v2591_v5 }
 0x218   : > { %v4893_v42 = vpop.f32.mrb[68].mxu1 }
 0x219   : > { %v5489_v44 = vadd.f32 %v7353_v21, %v4893_v42  ;;  %v2601_v34 = vpop.f32.mrb[69].mxu1 }
 0x21a   : > { %v5504_v53 = vadd.f32 %v7355_v63, %v2601_v34 }
 0x21c   : > { %v4896_v29 = vpop.f32.mrb[70].mxu1 }
 0x21d   : > { %v7438_v18 = vadd.f32 %v7359_v3, %v4896_v29  ;;  %v2611_v26 = vpop.f32.mrb[71].mxu1 }
 0x21e   : > { %v7441_v38 = vadd.f32 %v7361_v51, %v2611_v26 }
 0x220   : > { %v4899_v36 = vpop.f32.mrb[72].mxu1 }
 0x221   : > { %v7444_v10 = vadd.f32 %v7365_v48, %v4899_v36  ;;  %v2621_v58 = vpop.f32.mrb[73].mxu1 }
 0x222   : > { %v7447_v25 = vadd.f32 %v7367_v47, %v2621_v58 }
 0x224   : > { %v4902_v21 = vpop.f32.mrb[74].mxu1 }
 0x225   : > { %v7450_v63 = vadd.f32 %v7371_v6, %v4902_v21  ;;  %v2631_v16 = vpop.f32.mrb[75].mxu1 }
 0x226   : > { %v7453_v3 = vadd.f32 %v7373_v28, %v2631_v16 }
 0x228   : > { %v4905_v57 = vpop.f32.mrb[76].mxu1 }
 0x229   : > { %v7456_v51 = vadd.f32 %v7377_v40, %v4905_v57  ;;  %v5041_v19 = vpop.f32.mrb[80].mxu0  ;;  %v2641_v27 = vpop.f32.mrb[77].mxu1 }
 0x22a   : > { %v5402_v48 = vadd.f32 %v5399_v0, %v5041_v19  ;;  %v7459_v20 = vadd.f32 %v7379_v24, %v2641_v27  ;;  %v3231_v47 = vpop.f32.mrb[81].mxu0 }
 0x22b   : > { %v5417_v23 = vadd.f32 %v5414_v37, %v3231_v47 }
 0x22c   : > { %3441 = vst [vmem:[%s7463_s14 + $0x8] sm:$0xff] %v5402_v48  ;;  %v3541_v6 = vmul.f32 %v5402_v48, %v5402_v48  ;;  %v4908_v28 = vpop.f32.mrb[78].mxu1 }
 0x22d   : > { %3440 = vst [vmem:[%s7463_s14] sm:$0xff] %v5417_v23  ;;  %v3502_v40 = vadd.f32 %v5417_v23, %v5402_v48  ;;  %v3540_v46 = vmul.f32 %v5417_v23, %v5417_v23  ;;  %v7468_v50 = vadd.f32 %v7383_v13, %v4908_v28  ;;  %v5044_v24 = vpop.f32.mrb[62].mxu0  ;;  %v2651_v49 = vpop.f32.mrb[79].mxu1 }
 0x22e   : > { %v5432_v60 = vadd.f32 %v5429_v39, %v5044_v24  ;;  %v7471_v12 = vadd.f32 %v7385_v8, %v2651_v49  ;;  %v3241_v45 = vpop.f32.mrb[63].mxu0 }
 0x22f   : > { %v3572_v15 = vadd.f32 %v3541_v6, %v3540_v46  ;;  %v5447_v1 = vadd.f32 %v5444_v61, %v3241_v45 }
 0x230   : > { %3443 = vst [vmem:[%s7463_s14 + $0x18] sm:$0xff] %v5432_v60  ;;  %v4911_v35 = vpop.f32.mrb[80].mxu1  ;;  %v3543_v22 = vmul.f32 %v5432_v60, %v5432_v60 }
 0x231   : > { %3442 = vst [vmem:[%s7463_s14 + $0x10] sm:$0xff] %v5447_v1  ;;  %v3503_v0 = vadd.f32 %v5447_v1, %v3502_v40  ;;  %v3542_v31 = vmul.f32 %v5447_v1, %v5447_v1  ;;  %v7476_v37 = vadd.f32 %v7389_v7, %v4911_v35  ;;  %v5047_v13 = vpop.f32.mrb[64].mxu0  ;;  %v2661_v32 = vpop.f32.mrb[81].mxu1 }
 0x232   : > { %v5462_v30 = vadd.f32 %v5459_v33, %v5047_v13  ;;  %v7479_v39 = vadd.f32 %v7391_v54, %v2661_v32  ;;  %v3251_v8 = vpop.f32.mrb[65].mxu0 }
 0x233   : > { %v3573_v61 = vadd.f32 %v3572_v15, %v3542_v31  ;;  %v5477_v5 = vadd.f32 %v5474_v4, %v3251_v8  ;;  %v3504_v42 = vadd.f32 %v5432_v60, %v3503_v0 }
 0x234   : > { %3445 = vst [vmem:[%s7463_s14 + $0x28] sm:$0xff] %v5462_v30  ;;  %v3545_v21 = vmul.f32 %v5462_v30, %v5462_v30 }
 0x235   : > { %3444 = vst [vmem:[%s7463_s14 + $0x20] sm:$0xff] %v5477_v5  ;;  %v3505_v34 = vadd.f32 %v5477_v5, %v3504_v42  ;;  %v3544_v29 = vmul.f32 %v5477_v5, %v5477_v5  ;;  %v3574_v26 = vadd.f32 %v3573_v61, %v3543_v22  ;;  %v5050_v7 = vpop.f32.mrb[66].mxu0 }
 0x236   : > { %v5492_v36 = vadd.f32 %v5489_v44, %v5050_v7  ;;  %v3261_v58 = vpop.f32.mrb[67].mxu0 }
 0x237   : > { %v3575_v33 = vadd.f32 %v3574_v26, %v3544_v29  ;;  %v5507_v54 = vadd.f32 %v5504_v53, %v3261_v58  ;;  %v3506_v16 = vadd.f32 %v5462_v30, %v3505_v34 }
 0x238   : > { %3447 = vst [vmem:[%s7463_s14 + $0x38] sm:$0xff] %v5492_v36  ;;  %v3547_v23 = vmul.f32 %v5492_v36, %v5492_v36 }
 0x239   : > { %3446 = vst [vmem:[%s7463_s14 + $0x30] sm:$0xff] %v5507_v54  ;;  %v3507_v57 = vadd.f32 %v5507_v54, %v3506_v16  ;;  %v3546_v19 = vmul.f32 %v5507_v54, %v5507_v54  ;;  %v3576_v4 = vadd.f32 %v3575_v33, %v3545_v21  ;;  %v5053_v27 = vpop.f32.mrb[68].mxu0 }
 0x23a   : > { %v5522_v48 = vadd.f32 %v7438_v18, %v5053_v27  ;;  %v3271_v47 = vpop.f32.mrb[69].mxu0 }
 0x23b   : > { %v3577_v6 = vadd.f32 %v3576_v4, %v3546_v19  ;;  %v5537_v44 = vadd.f32 %v7441_v38, %v3271_v47  ;;  %v3508_v28 = vadd.f32 %v5492_v36, %v3507_v57 }
 0x23c   : > { %3449 = vst [vmem:[%s7463_s14 + $0x48] sm:$0xff] %v5522_v48  ;;  %v3549_v45 = vmul.f32 %v5522_v48, %v5522_v48 }
 0x23d   : > { %3448 = vst [vmem:[%s7463_s14 + $0x40] sm:$0xff] %v5537_v44  ;;  %v3509_v53 = vadd.f32 %v5537_v44, %v3508_v28  ;;  %v3548_v40 = vmul.f32 %v5537_v44, %v5537_v44  ;;  %v3578_v46 = vadd.f32 %v3577_v6, %v3547_v23  ;;  %v5056_v24 = vpop.f32.mrb[70].mxu0 }
 0x23e   : > { %v5552_v49 = vadd.f32 %v7444_v10, %v5056_v24  ;;  %v3281_v60 = vpop.f32.mrb[71].mxu0 }
 0x23f   : > { %v3579_v18 = vadd.f32 %v3578_v46, %v3548_v40  ;;  %v5567_v15 = vadd.f32 %v7447_v25, %v3281_v60  ;;  %v3510_v1 = vadd.f32 %v5522_v48, %v3509_v53 }
 0x240   : > { %3451 = vst [vmem:[%s7463_s14 + $0x58] sm:$0xff] %v5552_v49  ;;  %v3551_v30 = vmul.f32 %v5552_v49, %v5552_v49 }
 0x241   : > { %3450 = vst [vmem:[%s7463_s14 + $0x50] sm:$0xff] %v5567_v15  ;;  %v3511_v38 = vadd.f32 %v5567_v15, %v3510_v1  ;;  %v3550_v35 = vmul.f32 %v5567_v15, %v5567_v15  ;;  %v3580_v0 = vadd.f32 %v3579_v18, %v3549_v45  ;;  %v5059_v31 = vpop.f32.mrb[72].mxu0 }
 0x242   : > { %v5582_v13 = vadd.f32 %v7450_v63, %v5059_v31  ;;  %v3291_v32 = vpop.f32.mrb[73].mxu0 }
 0x243   : > { %v3581_v10 = vadd.f32 %v3580_v0, %v3550_v35  ;;  %v5597_v8 = vadd.f32 %v7453_v3, %v3291_v32  ;;  %v3512_v22 = vadd.f32 %v5552_v49, %v3511_v38 }
 0x244   : > { %3453 = vst [vmem:[%s7463_s14 + $0x68] sm:$0xff] %v5582_v13  ;;  %v3553_v26 = vmul.f32 %v5582_v13, %v5582_v13 }
 0x245   : > { %3452 = vst [vmem:[%s7463_s14 + $0x60] sm:$0xff] %v5597_v8  ;;  %v3513_v25 = vadd.f32 %v5597_v8, %v3512_v22  ;;  %v3552_v61 = vmul.f32 %v5597_v8, %v5597_v8  ;;  %v3582_v5 = vadd.f32 %v3581_v10, %v3551_v30  ;;  %v5062_v42 = vpop.f32.mrb[74].mxu0 }
 0x246   : > { %v5612_v34 = vadd.f32 %v7456_v51, %v5062_v42  ;;  %v3301_v29 = vpop.f32.mrb[75].mxu0 }
 0x247   : > { %v3583_v63 = vadd.f32 %v3582_v5, %v3552_v61  ;;  %v5627_v7 = vadd.f32 %v7459_v20, %v3301_v29  ;;  %v3514_v36 = vadd.f32 %v5582_v13, %v3513_v25 }
 0x248   : > { %3455 = vst [vmem:[%s7463_s14 + $0x78] sm:$0xff] %v5612_v34  ;;  %v3555_v57 = vmul.f32 %v5612_v34, %v5612_v34 }
 0x249   : > { %3454 = vst [vmem:[%s7463_s14 + $0x70] sm:$0xff] %v5627_v7  ;;  %v3515_v3 = vadd.f32 %v5627_v7, %v3514_v36  ;;  %v3554_v58 = vmul.f32 %v5627_v7, %v5627_v7  ;;  %v3584_v21 = vadd.f32 %v3583_v63, %v3553_v26  ;;  %v5065_v33 = vpop.f32.mrb[76].mxu0 }
 0x24a   : > { %v5642_v54 = vadd.f32 %v7468_v50, %v5065_v33  ;;  %v3311_v16 = vpop.f32.mrb[77].mxu0 }
 0x24b   : > { %v3585_v19 = vadd.f32 %v3584_v21, %v3554_v58  ;;  %v5657_v51 = vadd.f32 %v7471_v12, %v3311_v16  ;;  %v3516_v4 = vadd.f32 %v5612_v34, %v3515_v3 }
 0x24c   : > { %3457 = vst [vmem:[%s7463_s14 + $0x88] sm:$0xff] %v5642_v54  ;;  %v4991_v27 = vpop.f32.mrb[82].mxu1  ;;  %v3557_v40 = vmul.f32 %v5642_v54, %v5642_v54 }
 0x24d   : > { %3456 = vst [vmem:[%s7463_s14 + $0x80] sm:$0xff] %v5657_v51  ;;  %v3517_v20 = vadd.f32 %v5657_v51, %v3516_v4  ;;  %v3556_v48 = vmul.f32 %v5657_v51, %v5657_v51  ;;  %v3586_v47 = vadd.f32 %v3585_v19, %v3555_v57  ;;  %v5699_v23 = vadd.f32 %v7395_v9, %v4991_v27  ;;  %v5068_v6 = vpop.f32.mrb[78].mxu0  ;;  %v2999_v44 = vpop.f32.mrb[83].mxu1 }
 0x24e   : > { %v5672_v50 = vadd.f32 %v7476_v37, %v5068_v6  ;;  %v5714_v28 = vadd.f32 %v7397_v43, %v2999_v44  ;;  %v3321_v53 = vpop.f32.mrb[79].mxu0 }
 0x24f   : > { %v3587_v12 = vadd.f32 %v3586_v47, %v3556_v48  ;;  %v5687_v46 = vadd.f32 %v7479_v39, %v3321_v53  ;;  %v3518_v24 = vadd.f32 %v5642_v54, %v3517_v20 }
 0x250   : > { %3459 = vst [vmem:[%s7463_s14 + $0x98] sm:$0xff] %v5672_v50  ;;  %v4994_v49 = vpop.f32.mrb[84].mxu1  ;;  %v3559_v35 = vmul.f32 %v5672_v50, %v5672_v50 }
 0x251   : > { %3458 = vst [vmem:[%s7463_s14 + $0x90] sm:$0xff] %v5687_v46  ;;  %v3519_v60 = vadd.f32 %v5687_v46, %v3518_v24  ;;  %v3558_v45 = vmul.f32 %v5687_v46, %v5687_v46  ;;  %v3588_v9 = vadd.f32 %v3587_v12, %v3557_v40  ;;  %v5729_v18 = vadd.f32 %v7401_v52, %v4994_v49  ;;  %v3009_v15 = vpop.f32.mrb[85].mxu1  ;;  %v5071_v37 = vpop.f32.mrb[82].mxu0 }
 0x252   : > { %v5744_v43 = vadd.f32 %v7403_v55, %v3009_v15  ;;  %v5702_v1 = vadd.f32 %v5699_v23, %v5071_v37  ;;  %v3331_v38 = vpop.f32.mrb[83].mxu0 }
 0x253   : > { %v3589_v0 = vadd.f32 %v3588_v9, %v3558_v45  ;;  %v5717_v39 = vadd.f32 %v5714_v28, %v3331_v38  ;;  %v3520_v31 = vadd.f32 %v5672_v50, %v3519_v60 }
 0x254   : > { %v4997_v13 = vpop.f32.mrb[86].mxu1  ;;  %3461 = vst [vmem:[%s7463_s14 + $0xa8] sm:$0xff] %v5702_v1  ;;  %v3561_v5 = vmul.f32 %v5702_v1, %v5702_v1 }
 0x255   : > { %v5759_v32 = vadd.f32 %v7407_v11, %v4997_v13  ;;  %v3019_v30 = vpop.f32.mrb[87].mxu1  ;;  %3460 = vst [vmem:[%s7463_s14 + $0xa0] sm:$0xff] %v5717_v39  ;;  %v3521_v10 = vadd.f32 %v5717_v39, %v3520_v31  ;;  %v3560_v52 = vmul.f32 %v5717_v39, %v5717_v39  ;;  %v5074_v8 = vpop.f32.mrb[84].mxu0  ;;  %v3590_v22 = vadd.f32 %v3589_v0, %v3559_v35 }
 0x256   : > { %v5774_v55 = vadd.f32 %v7409_v41, %v3019_v30  ;;  %v5732_v25 = vadd.f32 %v5729_v18, %v5074_v8  ;;  %v3341_v61 = vpop.f32.mrb[85].mxu0 }
 0x257   : > { %v5747_v42 = vadd.f32 %v5744_v43, %v3341_v61  ;;  %v3522_v34 = vadd.f32 %v5702_v1, %v3521_v10  ;;  %v3591_v29 = vadd.f32 %v3590_v22, %v3560_v52 }
 0x258   : > { %v5000_v26 = vpop.f32.mrb[88].mxu1  ;;  %3463 = vst [vmem:[%s7463_s14 + $0xb8] sm:$0xff] %v5732_v25 }
 0x259   : > { %v5789_v11 = vadd.f32 %v7413_v2, %v5000_v26  ;;  %v3029_v63 = vpop.f32.mrb[89].mxu1  ;;  %3462 = vst [vmem:[%s7463_s14 + $0xb0] sm:$0xff] %v5747_v42  ;;  %v5077_v7 = vpop.f32.mrb[86].mxu0  ;;  %v3592_v36 = vadd.f32 %v3591_v29, %v3561_v5 }
 0x25a   : > { %v5804_v41 = vadd.f32 %v7415_v62, %v3029_v63  ;;  %v5762_v3 = vadd.f32 %v5759_v32, %v5077_v7  ;;  %v3351_v58 = vpop.f32.mrb[87].mxu0 }
 0x25b   : > { %v5777_v21 = vadd.f32 %v5774_v55, %v3351_v58 }
 0x25c   : > { %v5003_v33 = vpop.f32.mrb[90].mxu1  ;;  %3465 = vst [vmem:[%s7463_s14 + $0xc8] sm:$0xff] %v5762_v3 }
 0x25d   : > { %v5819_v54 = vadd.f32 %v7419_v59, %v5003_v33  ;;  %v3039_v2 = vpop.f32.mrb[91].mxu1  ;;  %3464 = vst [vmem:[%s7463_s14 + $0xc0] sm:$0xff] %v5777_v21  ;;  %v5080_v16 = vpop.f32.mrb[88].mxu0 }
 0x25e   : > { %v5834_v57 = vadd.f32 %v7421_v56, %v3039_v2  ;;  %v5792_v19 = vadd.f32 %v5789_v11, %v5080_v16  ;;  %v3361_v51 = vpop.f32.mrb[89].mxu0 }
 0x25f   : > { %v5807_v4 = vadd.f32 %v5804_v41, %v3361_v51  ;;  %v3493_v20 = vld [vmem:[%s7463_s14 + $0xb8] sm:$0xff] }
 0x260   : > { %v5006_v62 = vpop.f32.mrb[92].mxu1  ;;  %3467 = vst [vmem:[%s7463_s14 + $0xd8] sm:$0xff] %v5792_v19  ;;  %v3492_v27 = vld [vmem:[%s7463_s14 + $0xb0] sm:$0xff]  ;;  %v3563_v53 = vmul.f32 %v3493_v20, %v3493_v20 }
 0x261   : > { %v5843_v48 = vadd.f32 %v7424_v14, %v5006_v62  ;;  %v3049_v59 = vpop.f32.mrb[93].mxu1  ;;  %3466 = vst [vmem:[%s7463_s14 + $0xd0] sm:$0xff] %v5807_v4  ;;  %v5083_v47 = vpop.f32.mrb[90].mxu0  ;;  %v3523_v56 = vadd.f32 %v3522_v34, %v3492_v27  ;;  %v3562_v23 = vmul.f32 %v3492_v27, %v3492_v27 }
 0x262   : > { %v5849_v6 = vadd.f32 %v7427_v17, %v3049_v59  ;;  %v5822_v44 = vadd.f32 %v5819_v54, %v5083_v47  ;;  %v3371_v50 = vpop.f32.mrb[91].mxu0 }
 0x263   : > { %3952 = vst [vmem:[%s7463_s14 + $0xf8] sm:$0xff] %v5843_v48  ;;  %v5837_v14 = vadd.f32 %v5834_v57, %v3371_v50  ;;  %v3524_v28 = vadd.f32 %v3523_v56, %v3493_v20  ;;  %v3593_v40 = vadd.f32 %v3592_v36, %v3562_v23  ;;  %v3495_v12 = vld [vmem:[%s7463_s14 + $0xc8] sm:$0xff] }
 0x264   : > { %3951 = vst [vmem:[%s7463_s14 + $0xf0] sm:$0xff] %v5849_v6  ;;  %3469 = vst [vmem:[%s7463_s14 + $0xe8] sm:$0xff] %v5822_v44  ;;  %v3494_v17 = vld [vmem:[%s7463_s14 + $0xc0] sm:$0xff] }
 0x265   : > { %3468 = vst [vmem:[%s7463_s14 + $0xe0] sm:$0xff] %v5837_v14  ;;  %v3525_v46 = vadd.f32 %v3524_v28, %v3494_v17  ;;  %v3564_v24 = vmul.f32 %v3494_v17, %v3494_v17  ;;  %v3594_v49 = vadd.f32 %v3593_v40, %v3563_v53 }
 0x266   : > { %6078 = shalt.err (!%p6075_p7)
}
 0x267   : > { %s6079_s24 = scalar_lea.hbm %s7536_s28, 4096  ;;  %s6083_s17 = scalar_lea.hbm %s7629_s4, 8192 }
 0x268   : > { %p6080_p9 = scmp.ne.s32.totalorder %s7536_s28, %s6079_s24  ;;  %p6084_p5 = scmp.lt.u32.totalorder %s7536_s28, %s7629_s4 }
 0x269   : > { %p6085_p11 = scmp.lt.u32.totalorder %s6083_s17, %s6079_s24  ;;  %p6087_p4 = scmp.lt.u32.totalorder %s6079_s24, %s7536_s28 }
 0x26a   : > { %p6081_p1 = pnand %p6080_p9, %p6302_p12 }
 0x26b   : > { %p6086_p2 = por %p6085_p11, %p6084_p5 }
 0x26c   : > { %p6082_p0 = pneg %p6081_p1 }
 0x26d   : > { %p6088_p6 = por %p6087_p4, %p6086_p2 }
 0x26f   : > { %p6089_p8 = pnand %p6088_p6, %p6082_p0 }
 0x271   : > { %6092 = shalt.err (!%p6089_p8)
}
 0x272   : > { %s6175_s29 = smov 128   ;;  %s6176_s10 = smov 8   ;;  %v3526_v60 = vadd.f32 %v3525_v46, %v3495_v12  ;;  %v3565_v45 = vmul.f32 %v3495_v12, %v3495_v12  ;;  %v3595_v9 = vadd.f32 %v3594_v49, %v3564_v24  ;;  %v3496_v18 = vld [vmem:[%s7463_s14 + $0xd0] sm:$0xff]  ;;  %v3497_v15 = vld [vmem:[%s7463_s14 + $0xd8] sm:$0xff]  ;;  %v3498_v39 = vld [vmem:[%s7463_s14 + $0xe0] sm:$0xff] }
 0x273   : > { %5946 = dma.vmem_to_hbm [thread:$0]  (%p6302_p12), %s7538_s15, 4096, %s7536_s28, %s3611_s27, %s6175_s29, %s6175_s29, %s6176_s10   ;;  %v3566_v43 = vmul.f32 %v3496_v18, %v3496_v18  ;;  %v3567_v35 = vmul.f32 %v3497_v15, %v3497_v15  ;;  %v3568_v32 = vmul.f32 %v3498_v39, %v3498_v39 }
 0x274   : > { %v3527_v37 = vadd.f32 %v3526_v60, %v3496_v18  ;;  %v3596_v1 = vadd.f32 %v3595_v9, %v3565_v45  ;;  %v3499_v31 = vld [vmem:[%s7463_s14 + $0xe8] sm:$0xff]  ;;  %v3500_v10 = vld [vmem:[%s7463_s14 + $0xf0] sm:$0xff]  ;;  %v3501_v55 = vld [vmem:[%s7463_s14 + $0xf8] sm:$0xff]  ;;  %s3768_s15 = sshll.u32 %s6353_s23, 1  ;;  %s3957_s14 = sshll.u32 %s6229_s22, 5 }
 0x275   : > { %v3569_v8 = vmul.f32 %v3499_v31, %v3499_v31  ;;  %v3570_v61 = vmul.f32 %v3500_v10, %v3500_v10  ;;  %v3571_v34 = vmul.f32 %v3501_v55, %v3501_v55  ;;  %s268_s28 = scalar_lea.vmem [#allocation8], %s3768_s15  ;;  %s7581_s7 = scalar_lea.hbm %s7630_s5, %s3957_s14 }
 0x276   : > { %v3528_v38 = vadd.f32 %v3527_v37, %v3497_v15  ;;  %v3597_v0 = vadd.f32 %v3596_v1, %v3566_v43  ;;  %s3645_s27 = sshll.u32 %s268_s28, 4  ;;  %s3616_s24 = scalar_lea.sflag [#allocation9], %s6353_s23  ;;  %s7583_s27 = int_to_ptr.vmem [resolvable:$true] %s3645_s27 }
 0x277   : > { %s6093_s26 = scalar_lea.vmem %s7583_s27, 32  ;;  %s6177_s22 = smov [#allocation8]  }
 0x278   : > { %v3529_v13 = vadd.f32 %v3528_v38, %v3498_v39  ;;  %v3598_v30 = vadd.f32 %v3597_v0, %v3567_v35  ;;  %p6094_p10 = scmp.ne.s32.totalorder %s7583_s27, %s6093_s26  ;;  %s6097_s16 = sshll.u32 %s6177_s22, 4  ;;  %s6098_s16 = int_to_ptr.vmem [resolvable:$false] %s6097_s16 }
 0x279   : > { %s6099_s17 = scalar_lea.vmem %s6098_s16, 64  ;;  %p6100_p7 = scmp.lt.s32.totalorder %s7583_s27, %s6098_s16 }
 0x27a   : > { %v3530_v52 = vadd.f32 %v3529_v13, %v3499_v31  ;;  %v3599_v22 = vadd.f32 %v3598_v30, %v3568_v32  ;;  %p6095_p13 = pnand %p6094_p10, %p6302_p12  ;;  %p6101_p9 = scmp.lt.s32.totalorder %s6099_s17, %s6093_s26 }
 0x27c   : > { %v3531_v25 = vadd.f32 %v3530_v52, %v3500_v10  ;;  %v3600_v5 = vadd.f32 %v3599_v22, %v3569_v8  ;;  %p6096_p3 = pneg %p6095_p13  ;;  %p6102_p1 = por %p6101_p9, %p6100_p7 }
 0x27e   : > { %v3532_v42 = vadd.f32 %v3531_v25, %v3501_v55  ;;  %v3601_v29 = vadd.f32 %v3600_v5, %v3570_v61  ;;  %p6103_p0 = pnand %p6102_p1, %p6096_p3 }
 0x280   : > { %v3533_v26 = vrot.slane %v3532_v42, 4  ;;  %v3602_v11 = vadd.f32 %v3601_v29, %v3571_v34 }
 0x282   : > { %v3534_v63 = vadd.f32 %v3533_v26, %v3532_v42  ;;  %v3603_v7 = vrot.slane %v3602_v11, 4 }
 0x284   : > { %v3535_v36 = vrot.slane %v3534_v63, 2  ;;  %v3604_v41 = vadd.f32 %v3603_v7, %v3602_v11 }
 0x286   : > { %v3536_v3 = vadd.f32 %v3535_v36, %v3534_v63  ;;  %v3605_v58 = vrot.slane %v3604_v41, 2 }
 0x288   : > { %v3537_v21 = vrot.slane %v3536_v3, 1  ;;  %v3606_v33 = vadd.f32 %v3605_v58, %v3604_v41 }
 0x28a   : > { %v3538_v54 = vadd.f32 %v3537_v21, %v3536_v3  ;;  %v3607_v2 = vrot.slane %v3606_v33, 1 }
 0x28c   : > { %3539 = vst [vmem:[%s268_s28] sm:$0x1] %v3538_v54  ;;  %v3608_v16 = vadd.f32 %v3607_v2, %v3606_v33 }
 0x28e   : > { %3609 = vst [vmem:[%s268_s28 + $0x1] sm:$0x1] %v3608_v16 }
 0x28f   : > { %6106 = shalt.err (!%p6103_p0)
}
 0x290   : > { %s6107_s23 = scalar_lea.hbm %s7581_s7, 32  ;;  %s6111_s29 = scalar_lea.hbm %s7630_s5, 64 }
 0x291   : > { %p6108_p5 = scmp.ne.s32.totalorder %s7581_s7, %s6107_s23  ;;  %p6112_p4 = scmp.lt.u32.totalorder %s7581_s7, %s7630_s5 }
 0x292   : > { %p6113_p6 = scmp.lt.u32.totalorder %s6111_s29, %s6107_s23  ;;  %p6115_p10 = scmp.lt.u32.totalorder %s6107_s23, %s7581_s7 }
 0x293   : > { %p6109_p11 = pnand %p6108_p5, %p6302_p12 }
 0x294   : > { %p6114_p8 = por %p6113_p6, %p6112_p4 }
 0x295   : > { %p6110_p2 = pneg %p6109_p11 }
 0x296   : > { %p6116_p13 = por %p6115_p10, %p6114_p8 }
 0x298   : > { %p6117_p3 = pnand %p6116_p13, %p6110_p2 }
 0x29a   : > { %6120 = shalt.err (!%p6117_p3)
}
 0x29b   : > { %5947 = dma.vmem_to_hbm [thread:$0]  (%p6302_p12), %s7583_s27, 32, %s7581_s7, %s3616_s24  }
 0x29c PF: > { %s3657_s14 = sand.u32 1, %s6155_s18   ;;  %p7688_p7 = scmp.ne.s32.totalorder %s7650_s25, 0 }
 0x29d   : > { %p7689_p9 = scmp.ge.s32.totalorder %s6167_s21, 2  ;;  %s3658_s28 = scalar_lea.sflag [#allocation4], %s3657_s14 }
 0x29f   : > { %p5959_p1 = pnand %p7689_p9, %p7688_p7 }
 0x2a1   : > { %6146 = dma.done.wait (!%p5959_p1), %s3658_s28, 4096  }
 0x2a2   : > { %6148 = vsyncadd (!%p5959_p1), %s3658_s28, 4294963200  ;;  %s3667_s11 = scalar_lea.sflag [#allocation9], %s3657_s14 }
 0x2a3   : > { %6150 = dma.done.wait (!%p5959_p1), %s3667_s11, 32  }
 0x2a4   : > { %6152 = vsyncadd (!%p5959_p1), %s3667_s11, 4294967264  ;;  %p23_p12 = scmp.ge.s32.totalorder %s6264_s30, 4   ;;  %s7690_s18 = smov %s6159_s19 }
 0x2a5   : > { %s7691_s19 = smov %s6163_s20  ;;  %s7692_s20 = smov %s6298_s8 }
 0x2a6   : > { %s7693_s21 = smov %s6264_s30  ;;  %25 = sbr.rel (!%p23_p12) target bundleno = 8 (0x8), region = 111 }
 0x2ad   :  { %3672 = vsyncpa [#allocation3], 1 }
 0x2ae   :  { %3674 = vsyncpa [#allocation3 + $0x1], 1 }
 0x2af   :  { %3675 = vsyncpa [#allocation6], 1 }
 0x2b0   :  { %3676 = vsyncpa [#allocation4], 1 }
 0x2b1   :  { %3678 = vsyncpa [#allocation4 + $0x1], 1 }
 0x2b2   :  { %3679 = vsyncpa [#allocation9], 1 }
 0x2b3   :  { %3681 = vsyncpa [#allocation9 + $0x1], 1 }

</bundles_post_ra>
